<compile_context>
chip_gen: v7x
topology: tpu7x:2x2x1
jax: 0.10.0
libtpu: 0.0.40
codegen_flags: <defaults>
</compile_context>

<pallas_src>
import numpy as np

import jax
import jax.numpy as jnp
from jax import lax
from jax.experimental import pallas as pl
from jax.experimental.pallas import tpu as pltpu

NEG_SLOPE = 0.01   # nn.LeakyReLU default negative slope
LANES = 128        # lane-dense width used for operand slabs and outputs


# ---------------------------------------------------------------------------
# One-time host-side weight preprocessing.
#
# Every layer is evaluated inside the kernel as
#     Y = act( bias + X_cat @ Q_cat )
# with X_cat = concat_kh( vertical-tap-gather_kh(X) )    (B*OH, k*W*Ci)
# and  Q_cat folding, per vertical tap, the horizontal gather/scatter together
# with that tap's weights                                 (k*W*Ci, OW*Co).
# ---------------------------------------------------------------------------
def _conv_qcat(weight, bias, H, W, stride, pad):
    """nn.Conv2d weight (Co, Ci, k, k) -> (Q_cat, bias_row, (OH, OW, Co))."""
    weight = np.asarray(weight, np.float32)
    bias = np.asarray(bias, np.float32)
    Co, Ci, k, _ = weight.shape
    OH = (H + 2 * pad - k) // stride + 1
    OW = (W + 2 * pad - k) // stride + 1
    m_col = np.zeros((k, W, OW), np.float32)        # w = ow*s + kw - p gather
    for kw in range(k):
        for ow in range(OW):
            w = ow * stride + kw - pad
            if 0 <= w < W:
                m_col[kw, w, ow] = 1.0
    qs = [np.einsum("kwo,cik->wioc", m_col, weight[:, :, kh, :])
            .reshape(W * Ci, OW * Co) for kh in range(k)]
    q_cat = np.concatenate(qs, axis=0)              # (k*W*Ci, OW*Co)
    b_row = np.tile(bias.reshape(1, Co), (OW, 1)).reshape(OW * Co)
    return q_cat, b_row, (OH, OW, Co)


def _tconv_qcat(weight, bias, H, W, stride, pad, out_pad):
    """nn.ConvTranspose2d weight (Ci, Co, k, k) -> (Q_cat, bias_row, dims).

    The kernel consumes the transposed conv as a stride-1 conv over a
    zero-dilated, zero-padded input, so the vertical tap blocks are stacked in
    flipped order (gather tap kh' pairs with weight tap k-1-kh').
    """
    weight = np.asarray(weight, np.float32)
    bias = np.asarray(bias, np.float32)
    Ci, Co, k, _ = weight.shape
    assert k - 1 - pad >= 0 and out_pad <= pad
    OH = (H - 1) * stride - 2 * pad + k + out_pad
    OW = (W - 1) * stride - 2 * pad + k + out_pad
    m_col = np.zeros((k, W, OW), np.float32)        # ow = w*s - p + kw scatter
    for kw in range(k):
        for w in range(W):
            ow = w * stride - pad + kw
            if 0 <= ow < OW:
                m_col[kw, w, ow] = 1.0
    qs = [np.einsum("kwo,ick->wioc", m_col, weight[:, :, kh, :])
            .reshape(W * Ci, OW * Co) for kh in range(k)]
    q_cat = np.concatenate(qs[::-1], axis=0)        # vertical tap flip
    b_row = np.tile(bias.reshape(1, Co), (OW, 1)).reshape(OW * Co)
    return q_cat, b_row, (OH, OW, Co)


def prepare_autoencoder(params, cfg, batch, height, width):
    """Pack PyTorch-layout parameters into the two kernel operand slabs."""
    s1, s2 = cfg["stride1"], cfg["stride2"]
    p1, p2 = cfg["padding1"], cfg["padding2"]
    k1, k2 = cfg["kernel_size1"], cfg["kernel_size2"]
    layer_defs = (
        ("enc1", "conv",  k1, s1, p1, 0),
        ("enc2", "conv",  k1, s1, p1, 0),
        ("enc3", "conv",  k2, s2, p2, 0),
        ("dec1", "tconv", k2, s2, p2, 1),
        ("dec2", "tconv", k1, s2, p2, 1),
        ("dec3", "tconv", k1, s2, p2, 0),
    )
    meta, q_blocks, b_rows = [], [], []
    H, W, Cin = height, width, cfg["input_channel"]
    for name, kind, k, stride, pad, out_pad in layer_defs:
        w_, b_ = params[name]
        if kind == "conv":
            q_cat, b_row, (OH, OW, Co) = _conv_qcat(w_, b_, H, W, stride, pad)
            buf_h = H + 2 * pad            # staged rows per batch image
            row_off, row_step, gather_stride = pad, 1, stride
        else:
            q_cat, b_row, (OH, OW, Co) = _tconv_qcat(w_, b_, H, W, stride, pad,
                                                     out_pad)
            buf_h = (H - 1) * stride + 1 + 2 * (k - 1 - pad) + out_pad
            row_off, row_step, gather_stride = k - 1 - pad, stride, 1
        assert OW * Co <= LANES, "layer output row wider than one lane tile"
        meta.append(dict(k=k, Hin=H, OH=OH, OW=OW, Co=Co,
                         win=W * Cin, wout=OW * Co,
                         buf_h=buf_h, row_off=row_off, row_step=row_step,
                         gather_stride=gather_stride, qrows=q_cat.shape[0]))
        q_blocks.append(q_cat)
        b_rows.append(b_row)
        H, W, Cin = OH, OW, Co

    # Pack every Q block into one lane-dense bf16 slab (16-row aligned blocks)
    # and every bias row into one small f32 slab: 2 parameter DMAs total.
    offs, total = [], 0
    for q in q_blocks:
        offs.append(total)
        total += ((q.shape[0] + 15) // 16) * 16
    q_slab = np.zeros((total, LANES), np.float32)
    for off, q in zip(offs, q_blocks):
        q_slab[off:off + q.shape[0], :q.shape[1]] = q
    b_slab = np.zeros((len(b_rows), LANES), np.float32)
    for i, br in enumerate(b_rows):
        b_slab[i, :br.shape[0]] = br
    for m, off in zip(meta, offs):
        m["qoff"] = off

    return dict(meta=meta, batch=batch,
                qslab=jnp.asarray(q_slab, jnp.bfloat16),
                bslab=jnp.asarray(b_slab, jnp.float32))


# ---------------------------------------------------------------------------
# Forward pass: one pallas_call for the whole network.
# ---------------------------------------------------------------------------
_ACTS = ("lrelu", "lrelu", "none", "lrelu", "lrelu", "sigmoid")


def autoencoder_forward(prepared, x):
    """x: NCHW float32.  Returns (x_rec, z) in NCHW, like the PyTorch module."""
    meta, B = prepared["meta"], prepared["batch"]
    qslab, bslab = prepared["qslab"], prepared["bslab"]
    _, C, H, W = x.shape
    x_mat = x.transpose(0, 2, 3, 1).reshape(B * H, W * C)   # channels-last 2-D

    zH, zOW, zCo = meta[2]["OH"], meta[2]["OW"], meta[2]["Co"]
    oH, oOW, oCo = meta[5]["OH"], meta[5]["OW"], meta[5]["Co"]

    def kernel(x_ref, q_ref, b_ref, xrec_ref, z_ref, *bufs):
        f32 = jnp.float32

        # Zero the staging buffers once: conv guard rows and the zero rows of
        # the dilated transposed-conv inputs stay zero from here on.
        for buf in bufs:
            buf[...] = jnp.zeros(buf.shape, f32)

        def stage(buf, m, val):
            """Place a layer's input rows into its padded / dilated buffer."""
            hb, off, step, hin = m["buf_h"], m["row_off"], m["row_step"], m["Hin"]
            for b in range(B):
                if step == 1:                       # conv: contiguous interior
                    buf[b * hb + off: b * hb + off + hin, :] = \
                        val[b * hin:(b + 1) * hin, :]
                else:                               # tconv: zero-dilated rows
                    for h in range(hin):
                        r = b * hb + off + h * step
                        buf[r:r + 1, :] = val[b * hin + h: b * hin + h + 1, :]

        def layer(buf, m, idx, act):
            hb, oh, k, gs = m["buf_h"], m["OH"], m["k"], m["gather_stride"]
            qoff, qrows, wout = m["qoff"], m["qrows"], m["wout"]
            rows = []
            for b in range(B):                      # B, k tiny & static
                taps = []
                for kh in range(k):
                    start = b * hb + kh
                    if gs == 1:
                        taps.append(buf[pl.ds(start, oh), :])
                    else:                           # strided vertical gather
                        taps.append(buf[pl.ds(start, oh, stride=gs), :])
                rows.append(jnp.concatenate(taps, axis=1))
            x_cat = jnp.concatenate(rows, axis=0) if B > 1 else rows[0]
            q = q_ref[qoff:qoff + qrows, 0:wout]    # bf16 block of the slab
            y = jnp.dot(x_cat.astype(jnp.bfloat16), q,
                        preferred_element_type=jnp.float32)
            y = y + b_ref[idx:idx + 1, 0:wout]
            if act == "lrelu":
                y = jnp.where(y >= 0, y, NEG_SLOPE * y)
            elif act == "sigmoid":
                y = pl.reciprocal(1.0 + jnp.exp(-y), approx=True)
                y = jnp.clip(y, 0.0, 1.0)           # approx recip may overshoot
            return y                                # f32, (B*OH, wout)

        def lane_pad(v):                            # lane-dense (…,128) store
            return jnp.concatenate(
                [v, jnp.zeros((v.shape[0], LANES - v.shape[1]), f32)], axis=1)

        stage(bufs[0], meta[0], x_ref[...])
        h = None
        for i, m in enumerate(meta):
            h = layer(bufs[i], m, i, _ACTS[i])
            if i == 2:                              # latent output
                z_ref[...] = lane_pad(h)
            if i + 1 < len(meta):
                stage(bufs[i + 1], meta[i + 1], h)
        xrec_ref[...] = lane_pad(h)                 # reconstruction output

    vmem = pl.BlockSpec(memory_space=pltpu.MemorySpace.VMEM)
    scratch = [pltpu.VMEM((B * m["buf_h"], m["win"]), jnp.float32) for m in meta]
    xrec_pad, z_pad = pl.pallas_call(
        kernel,
        out_shape=(jax.ShapeDtypeStruct((B * oH, LANES), jnp.float32),
                   jax.ShapeDtypeStruct((B * zH, LANES), jnp.float32)),
        in_specs=[vmem, vmem, vmem],
        out_specs=(vmem, vmem),
        scratch_shapes=scratch,
    )(x_mat, qslab, bslab)

    # TODO(synk): the NHWC<->NCHW transposes below are tiny host-side XLA glue
    # kept only to preserve the module's NCHW interface.
    x_rec = (xrec_pad[:, :oOW * oCo].reshape(B, oH, oOW, oCo)
             .transpose(0, 3, 1, 2))
    z = z_pad[:, :zOW * zCo].reshape(B, zH, zOW, zCo).transpose(0, 3, 1, 2)
    return x_rec, z


# ---------------------------------------------------------------------------
# Parameter init (matches PyTorch's default Conv / ConvTranspose init bounds).
# ---------------------------------------------------------------------------
def init_params(key, cfg):
    cin, h1, h2, lat = (cfg["input_channel"], cfg["hidden_channel1"],
                        cfg["hidden_channel2"], cfg["latent_channel"])
    k1, k2 = cfg["kernel_size1"], cfg["kernel_size2"]

    def conv_init(key, cout, cin_, k):
        kw, kb = jax.random.split(key)
        bound = float(1.0 / np.sqrt(cin_ * k * k))
        w = jax.random.uniform(kw, (cout, cin_, k, k), jnp.float32, -bound, bound)
        b = jax.random.uniform(kb, (cout,), jnp.float32, -bound, bound)
        return w, b

    def tconv_init(key, cin_, cout, k):
        kw, kb = jax.random.split(key)
        bound = float(1.0 / np.sqrt(cout * k * k))  # PyTorch fan_in for ConvT
        w = jax.random.uniform(kw, (cin_, cout, k, k), jnp.float32, -bound, bound)
        b = jax.random.uniform(kb, (cout,), jnp.float32, -bound, bound)
        return w, b

    keys = jax.random.split(key, 6)
    return {
        "enc1": conv_init(keys[0], h1, cin, k1),
        "enc2": conv_init(keys[1], h2, h1, k1),
        "enc3": conv_init(keys[2], lat, h2, k2),
        "dec1": tconv_init(keys[3], lat, h2, k2),
        "dec2": tconv_init(keys[4], h2, h1, k1),
        "dec3": tconv_init(keys[5], h1, cin, k1),
    }


# ---------------------------------------------------------------------------
# Pure-XLA reference (lax convolutions) — used only for correctness checking.
# ---------------------------------------------------------------------------
def _reference_forward(params, x, cfg):
    s1, s2 = cfg["stride1"], cfg["stride2"]
    p1, p2 = cfg["padding1"], cfg["padding2"]
    dn = ("NCHW", "OIHW", "NCHW")

    def conv(x, w, b, s, p):
        y = lax.conv_general_dilated(x, w, (s, s), ((p, p), (p, p)),
                                     dimension_numbers=dn)
        return y + b.reshape(1, -1, 1, 1)

    def tconv(x, w, b, s, p, op):
        k = w.shape[-1]
        w2 = jnp.flip(w, (-2, -1)).transpose(1, 0, 2, 3)
        pad = (k - 1 - p, k - 1 - p + op)
        y = lax.conv_general_dilated(x, w2, (1, 1), (pad, pad),
                                     lhs_dilation=(s, s), dimension_numbers=dn)
        return y + b.reshape(1, -1, 1, 1)

    lrelu = lambda t: jnp.where(t >= 0, t, NEG_SLOPE * t)
    h = lrelu(conv(x, *params["enc1"], s1, p1))
    h = lrelu(conv(h, *params["enc2"], s1, p1))
    z = conv(h, *params["enc3"], s2, p2)
    d = lrelu(tconv(z, *params["dec1"], s2, p2, 1))
    d = lrelu(tconv(d, *params["dec2"], s2, p2, 1))
    x_rec = jax.nn.sigmoid(tconv(d, *params["dec3"], s2, p2, 0))
    return x_rec, z


if __name__ == "__main__":
    cfg = {
        "input_channel": 4,
        "hidden_channel1": 8,
        "hidden_channel2": 16,
        "latent_channel": 8,
        "stride1": 2,
        "stride2": 2,
        "padding1": 1,
        "padding2": 1,
        "kernel_size1": 3,
        "kernel_size2": 3,
    }
    key = jax.random.PRNGKey(0)
    kx, kp = jax.random.split(key)
    B, H, W = 2, 16, 16
    x = jax.random.normal(kx, (B, cfg["input_channel"], H, W), jnp.float32)
    params = init_params(kp, cfg)

    prepared = prepare_autoencoder(params, cfg, B, H, W)  # one-time weight prep
    fwd = jax.jit(lambda xx: autoencoder_forward(prepared, xx))

    x_rec, z = fwd(x)
    jax.block_until_ready((x_rec, z))

    assert z.shape == (B, cfg["latent_channel"], 2, 2), z.shape
    assert x_rec.shape == (B, cfg["input_channel"], 15, 15), x_rec.shape
    assert bool(jnp.all((x_rec >= 0.0) & (x_rec <= 1.0)))

    # Numerical check against a pure-XLA reference of the same module.
    # Loose tolerance covers the bf16 matmul operands used in the kernel.
    x_ref, z_ref = _reference_forward(params, x, cfg)
    assert bool(jnp.allclose(z, z_ref, atol=5e-2, rtol=5e-2)), "latent mismatch"
    assert bool(jnp.allclose(x_rec, x_ref, atol=5e-2, rtol=5e-2)), "output mismatch"

    print("KERNEL_OK")
</pallas_src>

<mosaic_0001>
module attributes {stable_mosaic.version = 11 : i64} {
  func.func @kernel(%arg0: memref<32x64xf32, #tpu.memory_space<vmem>>, %arg1: memref<1008x128xbf16, #tpu.memory_space<vmem>>, %arg2: memref<6x128xf32, #tpu.memory_space<vmem>>, %arg3: memref<30x128xf32, #tpu.memory_space<vmem>>, %arg4: memref<4x128xf32, #tpu.memory_space<vmem>>, %arg5: memref<36x64xf32, #tpu.memory_space<vmem>>, %arg6: memref<20x64xf32, #tpu.memory_space<vmem>>, %arg7: memref<12x64xf32, #tpu.memory_space<vmem>>, %arg8: memref<12x16xf32, #tpu.memory_space<vmem>>, %arg9: memref<20x64xf32, #tpu.memory_space<vmem>>, %arg10: memref<34x64xf32, #tpu.memory_space<vmem>>) attributes {dimension_semantics = [], scalar_prefetch = 0 : i64, scratch_operands = 6 : i64, tpu.core_type = #tpu.core_type<tc>} {
    %cst = arith.constant 0.000000e+00 : f32
    %0 = vector.broadcast %cst : f32 to vector<36x64xf32>
    %c0 = arith.constant 0 : index
    %c0_0 = arith.constant 0 : index
    %1 = vector.load %arg5[%c0, %c0_0] : memref<36x64xf32, #tpu.memory_space<vmem>>, vector<36x64xf32>
    tpu.vector_store %arg5[%c0, %c0_0], %0 {strides = array<i32>} : memref<36x64xf32, #tpu.memory_space<vmem>>, vector<36x64xf32>,
    %cst_1 = arith.constant 0.000000e+00 : f32
    %2 = vector.broadcast %cst_1 : f32 to vector<20x64xf32>
    %c0_2 = arith.constant 0 : index
    %c0_3 = arith.constant 0 : index
    %3 = vector.load %arg6[%c0_2, %c0_3] : memref<20x64xf32, #tpu.memory_space<vmem>>, vector<20x64xf32>
    tpu.vector_store %arg6[%c0_2, %c0_3], %2 {strides = array<i32>} : memref<20x64xf32, #tpu.memory_space<vmem>>, vector<20x64xf32>,
    %cst_4 = arith.constant 0.000000e+00 : f32
    %4 = vector.broadcast %cst_4 : f32 to vector<12x64xf32>
    %c0_5 = arith.constant 0 : index
    %c0_6 = arith.constant 0 : index
    %5 = vector.load %arg7[%c0_5, %c0_6] : memref<12x64xf32, #tpu.memory_space<vmem>>, vector<12x64xf32>
    tpu.vector_store %arg7[%c0_5, %c0_6], %4 {strides = array<i32>} : memref<12x64xf32, #tpu.memory_space<vmem>>, vector<12x64xf32>,
    %cst_7 = arith.constant 0.000000e+00 : f32
    %6 = vector.broadcast %cst_7 : f32 to vector<12x16xf32>
    %c0_8 = arith.constant 0 : index
    %c0_9 = arith.constant 0 : index
    %7 = vector.load %arg8[%c0_8, %c0_9] : memref<12x16xf32, #tpu.memory_space<vmem>>, vector<12x16xf32>
    tpu.vector_store %arg8[%c0_8, %c0_9], %6 {strides = array<i32>} : memref<12x16xf32, #tpu.memory_space<vmem>>, vector<12x16xf32>,
    %cst_10 = arith.constant 0.000000e+00 : f32
    %8 = vector.broadcast %cst_10 : f32 to vector<20x64xf32>
    %c0_11 = arith.constant 0 : index
    %c0_12 = arith.constant 0 : index
    %9 = vector.load %arg9[%c0_11, %c0_12] : memref<20x64xf32, #tpu.memory_space<vmem>>, vector<20x64xf32>
    tpu.vector_store %arg9[%c0_11, %c0_12], %8 {strides = array<i32>} : memref<20x64xf32, #tpu.memory_space<vmem>>, vector<20x64xf32>,
    %cst_13 = arith.constant 0.000000e+00 : f32
    %10 = vector.broadcast %cst_13 : f32 to vector<34x64xf32>
    %c0_14 = arith.constant 0 : index
    %c0_15 = arith.constant 0 : index
    %11 = vector.load %arg10[%c0_14, %c0_15] : memref<34x64xf32, #tpu.memory_space<vmem>>, vector<34x64xf32>
    tpu.vector_store %arg10[%c0_14, %c0_15], %10 {strides = array<i32>} : memref<34x64xf32, #tpu.memory_space<vmem>>, vector<34x64xf32>,
    %c0_16 = arith.constant 0 : index
    %c0_17 = arith.constant 0 : index
    %12 = vector.load %arg0[%c0_16, %c0_17] : memref<32x64xf32, #tpu.memory_space<vmem>>, vector<32x64xf32>
    %13 = vector.extract_strided_slice %12 {offsets = [0, 0], sizes = [16, 64], strides = [1, 1]} : vector<32x64xf32> to vector<16x64xf32>
    %c1 = arith.constant 1 : index
    %c0_18 = arith.constant 0 : index
    %14 = vector.load %arg5[%c1, %c0_18] : memref<36x64xf32, #tpu.memory_space<vmem>>, vector<16x64xf32>
    tpu.vector_store %arg5[%c1, %c0_18], %13 {strides = array<i32>} : memref<36x64xf32, #tpu.memory_space<vmem>>, vector<16x64xf32>,
    %15 = vector.extract_strided_slice %12 {offsets = [16, 0], sizes = [16, 64], strides = [1, 1]} : vector<32x64xf32> to vector<16x64xf32>
    %c19 = arith.constant 19 : index
    %c0_19 = arith.constant 0 : index
    %16 = vector.load %arg5[%c19, %c0_19] : memref<36x64xf32, #tpu.memory_space<vmem>>, vector<16x64xf32>
    tpu.vector_store %arg5[%c19, %c0_19], %15 {strides = array<i32>} : memref<36x64xf32, #tpu.memory_space<vmem>>, vector<16x64xf32>,
    %c0_20 = arith.constant 0 : index
    %c0_21 = arith.constant 0 : index
    %17 = tpu.strided_load %arg5[%c0_20, %c0_21] {strides = array<i32: 2, 1>} : memref<36x64xf32, #tpu.memory_space<vmem>>, vector<8x64xf32>
    %c1_22 = arith.constant 1 : index
    %c0_23 = arith.constant 0 : index
    %18 = tpu.strided_load %arg5[%c1_22, %c0_23] {strides = array<i32: 2, 1>} : memref<36x64xf32, #tpu.memory_space<vmem>>, vector<8x64xf32>
    %c2 = arith.constant 2 : index
    %c0_24 = arith.constant 0 : index
    %19 = tpu.strided_load %arg5[%c2, %c0_24] {strides = array<i32: 2, 1>} : memref<36x64xf32, #tpu.memory_space<vmem>>, vector<8x64xf32>
    %20 = tpu.concatenate %17, %18, %19 in 1 : vector<8x64xf32>, vector<8x64xf32>, vector<8x64xf32> -> vector<8x192xf32>
    %c18 = arith.constant 18 : index
    %c0_25 = arith.constant 0 : index
    %21 = tpu.strided_load %arg5[%c18, %c0_25] {strides = array<i32: 2, 1>} : memref<36x64xf32, #tpu.memory_space<vmem>>, vector<8x64xf32>
    %c19_26 = arith.constant 19 : index
    %c0_27 = arith.constant 0 : index
    %22 = tpu.strided_load %arg5[%c19_26, %c0_27] {strides = array<i32: 2, 1>} : memref<36x64xf32, #tpu.memory_space<vmem>>, vector<8x64xf32>
    %c20 = arith.constant 20 : index
    %c0_28 = arith.constant 0 : index
    %23 = tpu.strided_load %arg5[%c20, %c0_28] {strides = array<i32: 2, 1>} : memref<36x64xf32, #tpu.memory_space<vmem>>, vector<8x64xf32>
    %24 = tpu.concatenate %21, %22, %23 in 1 : vector<8x64xf32>, vector<8x64xf32>, vector<8x64xf32> -> vector<8x192xf32>
    %25 = tpu.concatenate %20, %24 in 0 : vector<8x192xf32>, vector<8x192xf32> -> vector<16x192xf32>
    %c0_29 = arith.constant 0 : index
    %c0_30 = arith.constant 0 : index
    %26 = vector.load %arg1[%c0_29, %c0_30] : memref<1008x128xbf16, #tpu.memory_space<vmem>>, vector<192x64xbf16>
    %27 = arith.truncf %25 : vector<16x192xf32> to vector<16x192xbf16>
    %cst_31 = arith.constant dense<0.000000e+00> : vector<16x64xf32>
    %28 = tpu.matmul %27, %26, %cst_31 {dimension_numbers = #tpu.dot_dimension_numbers<[1], [0], [0], [1], [0, 0, 1, 1], [], []>} : vector<16x192xbf16>, vector<192x64xbf16>, vector<16x64xf32> -> vector<16x64xf32>
    %c0_32 = arith.constant 0 : index
    %c0_33 = arith.constant 0 : index
    %29 = vector.load %arg2[%c0_32, %c0_33] : memref<6x128xf32, #tpu.memory_space<vmem>>, vector<1x64xf32>
    %30 = vector.broadcast %29 : vector<1x64xf32> to vector<16x64xf32>
    %31 = arith.addf %28, %30 : vector<16x64xf32>
    %cst_34 = arith.constant 0.000000e+00 : f32
    %32 = vector.broadcast %cst_34 : f32 to vector<16x64xf32>
    %33 = arith.cmpf oge, %31, %32 : vector<16x64xf32>
    %cst_35 = arith.constant 0.00999999977 : f32
    %34 = vector.broadcast %cst_35 : f32 to vector<16x64xf32>
    %35 = arith.mulf %34, %31 : vector<16x64xf32>
    %36 = arith.select %33, %31, %35 : vector<16x64xi1>, vector<16x64xf32>
    %37 = vector.extract_strided_slice %36 {offsets = [0, 0], sizes = [8, 64], strides = [1, 1]} : vector<16x64xf32> to vector<8x64xf32>
    %c1_36 = arith.constant 1 : index
    %c0_37 = arith.constant 0 : index
    %38 = vector.load %arg6[%c1_36, %c0_37] : memref<20x64xf32, #tpu.memory_space<vmem>>, vector<8x64xf32>
    tpu.vector_store %arg6[%c1_36, %c0_37], %37 {strides = array<i32>} : memref<20x64xf32, #tpu.memory_space<vmem>>, vector<8x64xf32>,
    %39 = vector.extract_strided_slice %36 {offsets = [8, 0], sizes = [8, 64], strides = [1, 1]} : vector<16x64xf32> to vector<8x64xf32>
    %c11 = arith.constant 11 : index
    %c0_38 = arith.constant 0 : index
    %40 = vector.load %arg6[%c11, %c0_38] : memref<20x64xf32, #tpu.memory_space<vmem>>, vector<8x64xf32>
    tpu.vector_store %arg6[%c11, %c0_38], %39 {strides = array<i32>} : memref<20x64xf32, #tpu.memory_space<vmem>>, vector<8x64xf32>,
    %c0_39 = arith.constant 0 : index
    %c0_40 = arith.constant 0 : index
    %41 = tpu.strided_load %arg6[%c0_39, %c0_40] {strides = array<i32: 2, 1>} : memref<20x64xf32, #tpu.memory_space<vmem>>, vector<4x64xf32>
    %c1_41 = arith.constant 1 : index
    %c0_42 = arith.constant 0 : index
    %42 = tpu.strided_load %arg6[%c1_41, %c0_42] {strides = array<i32: 2, 1>} : memref<20x64xf32, #tpu.memory_space<vmem>>, vector<4x64xf32>
    %c2_43 = arith.constant 2 : index
    %c0_44 = arith.constant 0 : index
    %43 = tpu.strided_load %arg6[%c2_43, %c0_44] {strides = array<i32: 2, 1>} : memref<20x64xf32, #tpu.memory_space<vmem>>, vector<4x64xf32>
    %44 = tpu.concatenate %41, %42, %43 in 1 : vector<4x64xf32>, vector<4x64xf32>, vector<4x64xf32> -> vector<4x192xf32>
    %c10 = arith.constant 10 : index
    %c0_45 = arith.constant 0 : index
    %45 = tpu.strided_load %arg6[%c10, %c0_45] {strides = array<i32: 2, 1>} : memref<20x64xf32, #tpu.memory_space<vmem>>, vector<4x64xf32>
    %c11_46 = arith.constant 11 : index
    %c0_47 = arith.constant 0 : index
    %46 = tpu.strided_load %arg6[%c11_46, %c0_47] {strides = array<i32: 2, 1>} : memref<20x64xf32, #tpu.memory_space<vmem>>, vector<4x64xf32>
    %c12 = arith.constant 12 : index
    %c0_48 = arith.constant 0 : index
    %47 = tpu.strided_load %arg6[%c12, %c0_48] {strides = array<i32: 2, 1>} : memref<20x64xf32, #tpu.memory_space<vmem>>, vector<4x64xf32>
    %48 = tpu.concatenate %45, %46, %47 in 1 : vector<4x64xf32>, vector<4x64xf32>, vector<4x64xf32> -> vector<4x192xf32>
    %49 = tpu.concatenate %44, %48 in 0 : vector<4x192xf32>, vector<4x192xf32> -> vector<8x192xf32>
    %c192 = arith.constant 192 : index
    %c0_49 = arith.constant 0 : index
    %50 = vector.load %arg1[%c192, %c0_49] : memref<1008x128xbf16, #tpu.memory_space<vmem>>, vector<192x64xbf16>
    %51 = arith.truncf %49 : vector<8x192xf32> to vector<8x192xbf16>
    %cst_50 = arith.constant dense<0.000000e+00> : vector<8x64xf32>
    %52 = tpu.matmul %51, %50, %cst_50 {dimension_numbers = #tpu.dot_dimension_numbers<[1], [0], [0], [1], [0, 0, 1, 1], [], []>} : vector<8x192xbf16>, vector<192x64xbf16>, vector<8x64xf32> -> vector<8x64xf32>
    %c1_51 = arith.constant 1 : index
    %c0_52 = arith.constant 0 : index
    %53 = vector.load %arg2[%c1_51, %c0_52] : memref<6x128xf32, #tpu.memory_space<vmem>>, vector<1x64xf32>
    %54 = vector.broadcast %53 : vector<1x64xf32> to vector<8x64xf32>
    %55 = arith.addf %52, %54 : vector<8x64xf32>
    %cst_53 = arith.constant 0.000000e+00 : f32
    %56 = vector.broadcast %cst_53 : f32 to vector<8x64xf32>
    %57 = arith.cmpf oge, %55, %56 : vector<8x64xf32>
    %cst_54 = arith.constant 0.00999999977 : f32
    %58 = vector.broadcast %cst_54 : f32 to vector<8x64xf32>
    %59 = arith.mulf %58, %55 : vector<8x64xf32>
    %60 = arith.select %57, %55, %59 : vector<8x64xi1>, vector<8x64xf32>
    %61 = vector.extract_strided_slice %60 {offsets = [0, 0], sizes = [4, 64], strides = [1, 1]} : vector<8x64xf32> to vector<4x64xf32>
    %c1_55 = arith.constant 1 : index
    %c0_56 = arith.constant 0 : index
    %62 = vector.load %arg7[%c1_55, %c0_56] : memref<12x64xf32, #tpu.memory_space<vmem>>, vector<4x64xf32>
    tpu.vector_store %arg7[%c1_55, %c0_56], %61 {strides = array<i32>} : memref<12x64xf32, #tpu.memory_space<vmem>>, vector<4x64xf32>,
    %63 = vector.extract_strided_slice %60 {offsets = [4, 0], sizes = [4, 64], strides = [1, 1]} : vector<8x64xf32> to vector<4x64xf32>
    %c7 = arith.constant 7 : index
    %c0_57 = arith.constant 0 : index
    %64 = vector.load %arg7[%c7, %c0_57] : memref<12x64xf32, #tpu.memory_space<vmem>>, vector<4x64xf32>
    tpu.vector_store %arg7[%c7, %c0_57], %63 {strides = array<i32>} : memref<12x64xf32, #tpu.memory_space<vmem>>, vector<4x64xf32>,
    %c0_58 = arith.constant 0 : index
    %c0_59 = arith.constant 0 : index
    %65 = tpu.strided_load %arg7[%c0_58, %c0_59] {strides = array<i32: 2, 1>} : memref<12x64xf32, #tpu.memory_space<vmem>>, vector<2x64xf32>
    %c1_60 = arith.constant 1 : index
    %c0_61 = arith.constant 0 : index
    %66 = tpu.strided_load %arg7[%c1_60, %c0_61] {strides = array<i32: 2, 1>} : memref<12x64xf32, #tpu.memory_space<vmem>>, vector<2x64xf32>
    %c2_62 = arith.constant 2 : index
    %c0_63 = arith.constant 0 : index
    %67 = tpu.strided_load %arg7[%c2_62, %c0_63] {strides = array<i32: 2, 1>} : memref<12x64xf32, #tpu.memory_space<vmem>>, vector<2x64xf32>
    %68 = tpu.concatenate %65, %66, %67 in 1 : vector<2x64xf32>, vector<2x64xf32>, vector<2x64xf32> -> vector<2x192xf32>
    %c6 = arith.constant 6 : index
    %c0_64 = arith.constant 0 : index
    %69 = tpu.strided_load %arg7[%c6, %c0_64] {strides = array<i32: 2, 1>} : memref<12x64xf32, #tpu.memory_space<vmem>>, vector<2x64xf32>
    %c7_65 = arith.constant 7 : index
    %c0_66 = arith.constant 0 : index
    %70 = tpu.strided_load %arg7[%c7_65, %c0_66] {strides = array<i32: 2, 1>} : memref<12x64xf32, #tpu.memory_space<vmem>>, vector<2x64xf32>
    %c8 = arith.constant 8 : index
    %c0_67 = arith.constant 0 : index
    %71 = tpu.strided_load %arg7[%c8, %c0_67] {strides = array<i32: 2, 1>} : memref<12x64xf32, #tpu.memory_space<vmem>>, vector<2x64xf32>
    %72 = tpu.concatenate %69, %70, %71 in 1 : vector<2x64xf32>, vector<2x64xf32>, vector<2x64xf32> -> vector<2x192xf32>
    %73 = tpu.concatenate %68, %72 in 0 : vector<2x192xf32>, vector<2x192xf32> -> vector<4x192xf32>
    %c384 = arith.constant 384 : index
    %c0_68 = arith.constant 0 : index
    %74 = vector.load %arg1[%c384, %c0_68] : memref<1008x128xbf16, #tpu.memory_space<vmem>>, vector<192x16xbf16>
    %75 = arith.truncf %73 : vector<4x192xf32> to vector<4x192xbf16>
    %cst_69 = arith.constant dense<0.000000e+00> : vector<4x16xf32>
    %76 = tpu.matmul %75, %74, %cst_69 {dimension_numbers = #tpu.dot_dimension_numbers<[1], [0], [0], [1], [0, 0, 1, 1], [], []>} : vector<4x192xbf16>, vector<192x16xbf16>, vector<4x16xf32> -> vector<4x16xf32>
    %c2_70 = arith.constant 2 : index
    %c0_71 = arith.constant 0 : index
    %77 = vector.load %arg2[%c2_70, %c0_71] : memref<6x128xf32, #tpu.memory_space<vmem>>, vector<1x16xf32>
    %78 = vector.broadcast %77 : vector<1x16xf32> to vector<4x16xf32>
    %79 = arith.addf %76, %78 : vector<4x16xf32>
    %cst_72 = arith.constant 0.000000e+00 : f32
    %80 = vector.broadcast %cst_72 : f32 to vector<4x112xf32>
    %81 = tpu.concatenate %79, %80 in 1 : vector<4x16xf32>, vector<4x112xf32> -> vector<4x128xf32>
    %c0_73 = arith.constant 0 : index
    %c0_74 = arith.constant 0 : index
    %82 = vector.load %arg4[%c0_73, %c0_74] : memref<4x128xf32, #tpu.memory_space<vmem>>, vector<4x128xf32>
    tpu.vector_store %arg4[%c0_73, %c0_74], %81 {strides = array<i32>} : memref<4x128xf32, #tpu.memory_space<vmem>>, vector<4x128xf32>,
    %83 = vector.extract_strided_slice %79 {offsets = [0, 0], sizes = [1, 16], strides = [1, 1]} : vector<4x16xf32> to vector<1x16xf32>
    %c1_75 = arith.constant 1 : index
    %c0_76 = arith.constant 0 : index
    %84 = vector.load %arg8[%c1_75, %c0_76] : memref<12x16xf32, #tpu.memory_space<vmem>>, vector<1x16xf32>
    tpu.vector_store %arg8[%c1_75, %c0_76], %83 {strides = array<i32>} : memref<12x16xf32, #tpu.memory_space<vmem>>, vector<1x16xf32>,
    %85 = vector.extract_strided_slice %79 {offsets = [1, 0], sizes = [1, 16], strides = [1, 1]} : vector<4x16xf32> to vector<1x16xf32>
    %c3 = arith.constant 3 : index
    %c0_77 = arith.constant 0 : index
    %86 = vector.load %arg8[%c3, %c0_77] : memref<12x16xf32, #tpu.memory_space<vmem>>, vector<1x16xf32>
    tpu.vector_store %arg8[%c3, %c0_77], %85 {strides = array<i32>} : memref<12x16xf32, #tpu.memory_space<vmem>>, vector<1x16xf32>,
    %87 = vector.extract_strided_slice %79 {offsets = [2, 0], sizes = [1, 16], strides = [1, 1]} : vector<4x16xf32> to vector<1x16xf32>
    %c7_78 = arith.constant 7 : index
    %c0_79 = arith.constant 0 : index
    %88 = vector.load %arg8[%c7_78, %c0_79] : memref<12x16xf32, #tpu.memory_space<vmem>>, vector<1x16xf32>
    tpu.vector_store %arg8[%c7_78, %c0_79], %87 {strides = array<i32>} : memref<12x16xf32, #tpu.memory_space<vmem>>, vector<1x16xf32>,
    %89 = vector.extract_strided_slice %79 {offsets = [3, 0], sizes = [1, 16], strides = [1, 1]} : vector<4x16xf32> to vector<1x16xf32>
    %c9 = arith.constant 9 : index
    %c0_80 = arith.constant 0 : index
    %90 = vector.load %arg8[%c9, %c0_80] : memref<12x16xf32, #tpu.memory_space<vmem>>, vector<1x16xf32>
    tpu.vector_store %arg8[%c9, %c0_80], %89 {strides = array<i32>} : memref<12x16xf32, #tpu.memory_space<vmem>>, vector<1x16xf32>,
    %c0_81 = arith.constant 0 : index
    %c0_82 = arith.constant 0 : index
    %91 = vector.load %arg8[%c0_81, %c0_82] : memref<12x16xf32, #tpu.memory_space<vmem>>, vector<4x16xf32>
    %c1_83 = arith.constant 1 : index
    %c0_84 = arith.constant 0 : index
    %92 = vector.load %arg8[%c1_83, %c0_84] : memref<12x16xf32, #tpu.memory_space<vmem>>, vector<4x16xf32>
    %c2_85 = arith.constant 2 : index
    %c0_86 = arith.constant 0 : index
    %93 = vector.load %arg8[%c2_85, %c0_86] : memref<12x16xf32, #tpu.memory_space<vmem>>, vector<4x16xf32>
    %94 = tpu.concatenate %91, %92, %93 in 1 : vector<4x16xf32>, vector<4x16xf32>, vector<4x16xf32> -> vector<4x48xf32>
    %c6_87 = arith.constant 6 : index
    %c0_88 = arith.constant 0 : index
    %95 = vector.load %arg8[%c6_87, %c0_88] : memref<12x16xf32, #tpu.memory_space<vmem>>, vector<4x16xf32>
    %c7_89 = arith.constant 7 : index
    %c0_90 = arith.constant 0 : index
    %96 = vector.load %arg8[%c7_89, %c0_90] : memref<12x16xf32, #tpu.memory_space<vmem>>, vector<4x16xf32>
    %c8_91 = arith.constant 8 : index
    %c0_92 = arith.constant 0 : index
    %97 = vector.load %arg8[%c8_91, %c0_92] : memref<12x16xf32, #tpu.memory_space<vmem>>, vector<4x16xf32>
    %98 = tpu.concatenate %95, %96, %97 in 1 : vector<4x16xf32>, vector<4x16xf32>, vector<4x16xf32> -> vector<4x48xf32>
    %99 = tpu.concatenate %94, %98 in 0 : vector<4x48xf32>, vector<4x48xf32> -> vector<8x48xf32>
    %c576 = arith.constant 576 : index
    %c0_93 = arith.constant 0 : index
    %100 = vector.load %arg1[%c576, %c0_93] : memref<1008x128xbf16, #tpu.memory_space<vmem>>, vector<48x64xbf16>
    %101 = arith.truncf %99 : vector<8x48xf32> to vector<8x48xbf16>
    %cst_94 = arith.constant dense<0.000000e+00> : vector<8x64xf32>
    %102 = tpu.matmul %101, %100, %cst_94 {dimension_numbers = #tpu.dot_dimension_numbers<[1], [0], [0], [1], [0, 0, 1, 1], [], []>} : vector<8x48xbf16>, vector<48x64xbf16>, vector<8x64xf32> -> vector<8x64xf32>
    %c3_95 = arith.constant 3 : index
    %c0_96 = arith.constant 0 : index
    %103 = vector.load %arg2[%c3_95, %c0_96] : memref<6x128xf32, #tpu.memory_space<vmem>>, vector<1x64xf32>
    %104 = vector.broadcast %103 : vector<1x64xf32> to vector<8x64xf32>
    %105 = arith.addf %102, %104 : vector<8x64xf32>
    %cst_97 = arith.constant 0.000000e+00 : f32
    %106 = vector.broadcast %cst_97 : f32 to vector<8x64xf32>
    %107 = arith.cmpf oge, %105, %106 : vector<8x64xf32>
    %cst_98 = arith.constant 0.00999999977 : f32
    %108 = vector.broadcast %cst_98 : f32 to vector<8x64xf32>
    %109 = arith.mulf %108, %105 : vector<8x64xf32>
    %110 = arith.select %107, %105, %109 : vector<8x64xi1>, vector<8x64xf32>
    %111 = vector.extract_strided_slice %110 {offsets = [0, 0], sizes = [1, 64], strides = [1, 1]} : vector<8x64xf32> to vector<1x64xf32>
    %c1_99 = arith.constant 1 : index
    %c0_100 = arith.constant 0 : index
    %112 = vector.load %arg9[%c1_99, %c0_100] : memref<20x64xf32, #tpu.memory_space<vmem>>, vector<1x64xf32>
    tpu.vector_store %arg9[%c1_99, %c0_100], %111 {strides = array<i32>} : memref<20x64xf32, #tpu.memory_space<vmem>>, vector<1x64xf32>,
    %113 = vector.extract_strided_slice %110 {offsets = [1, 0], sizes = [1, 64], strides = [1, 1]} : vector<8x64xf32> to vector<1x64xf32>
    %c3_101 = arith.constant 3 : index
    %c0_102 = arith.constant 0 : index
    %114 = vector.load %arg9[%c3_101, %c0_102] : memref<20x64xf32, #tpu.memory_space<vmem>>, vector<1x64xf32>
    tpu.vector_store %arg9[%c3_101, %c0_102], %113 {strides = array<i32>} : memref<20x64xf32, #tpu.memory_space<vmem>>, vector<1x64xf32>,
    %115 = vector.extract_strided_slice %110 {offsets = [2, 0], sizes = [1, 64], strides = [1, 1]} : vector<8x64xf32> to vector<1x64xf32>
    %c5 = arith.constant 5 : index
    %c0_103 = arith.constant 0 : index
    %116 = vector.load %arg9[%c5, %c0_103] : memref<20x64xf32, #tpu.memory_space<vmem>>, vector<1x64xf32>
    tpu.vector_store %arg9[%c5, %c0_103], %115 {strides = array<i32>} : memref<20x64xf32, #tpu.memory_space<vmem>>, vector<1x64xf32>,
    %117 = vector.extract_strided_slice %110 {offsets = [3, 0], sizes = [1, 64], strides = [1, 1]} : vector<8x64xf32> to vector<1x64xf32>
    %c7_104 = arith.constant 7 : index
    %c0_105 = arith.constant 0 : index
    %118 = vector.load %arg9[%c7_104, %c0_105] : memref<20x64xf32, #tpu.memory_space<vmem>>, vector<1x64xf32>
    tpu.vector_store %arg9[%c7_104, %c0_105], %117 {strides = array<i32>} : memref<20x64xf32, #tpu.memory_space<vmem>>, vector<1x64xf32>,
    %119 = vector.extract_strided_slice %110 {offsets = [4, 0], sizes = [1, 64], strides = [1, 1]} : vector<8x64xf32> to vector<1x64xf32>
    %c11_106 = arith.constant 11 : index
    %c0_107 = arith.constant 0 : index
    %120 = vector.load %arg9[%c11_106, %c0_107] : memref<20x64xf32, #tpu.memory_space<vmem>>, vector<1x64xf32>
    tpu.vector_store %arg9[%c11_106, %c0_107], %119 {strides = array<i32>} : memref<20x64xf32, #tpu.memory_space<vmem>>, vector<1x64xf32>,
    %121 = vector.extract_strided_slice %110 {offsets = [5, 0], sizes = [1, 64], strides = [1, 1]} : vector<8x64xf32> to vector<1x64xf32>
    %c13 = arith.constant 13 : index
    %c0_108 = arith.constant 0 : index
    %122 = vector.load %arg9[%c13, %c0_108] : memref<20x64xf32, #tpu.memory_space<vmem>>, vector<1x64xf32>
    tpu.vector_store %arg9[%c13, %c0_108], %121 {strides = array<i32>} : memref<20x64xf32, #tpu.memory_space<vmem>>, vector<1x64xf32>,
    %123 = vector.extract_strided_slice %110 {offsets = [6, 0], sizes = [1, 64], strides = [1, 1]} : vector<8x64xf32> to vector<1x64xf32>
    %c15 = arith.constant 15 : index
    %c0_109 = arith.constant 0 : index
    %124 = vector.load %arg9[%c15, %c0_109] : memref<20x64xf32, #tpu.memory_space<vmem>>, vector<1x64xf32>
    tpu.vector_store %arg9[%c15, %c0_109], %123 {strides = array<i32>} : memref<20x64xf32, #tpu.memory_space<vmem>>, vector<1x64xf32>,
    %125 = vector.extract_strided_slice %110 {offsets = [7, 0], sizes = [1, 64], strides = [1, 1]} : vector<8x64xf32> to vector<1x64xf32>
    %c17 = arith.constant 17 : index
    %c0_110 = arith.constant 0 : index
    %126 = vector.load %arg9[%c17, %c0_110] : memref<20x64xf32, #tpu.memory_space<vmem>>, vector<1x64xf32>
    tpu.vector_store %arg9[%c17, %c0_110], %125 {strides = array<i32>} : memref<20x64xf32, #tpu.memory_space<vmem>>, vector<1x64xf32>,
    %c0_111 = arith.constant 0 : index
    %c0_112 = arith.constant 0 : index
    %127 = vector.load %arg9[%c0_111, %c0_112] : memref<20x64xf32, #tpu.memory_space<vmem>>, vector<8x64xf32>
    %c1_113 = arith.constant 1 : index
    %c0_114 = arith.constant 0 : index
    %128 = vector.load %arg9[%c1_113, %c0_114] : memref<20x64xf32, #tpu.memory_space<vmem>>, vector<8x64xf32>
    %c2_115 = arith.constant 2 : index
    %c0_116 = arith.constant 0 : index
    %129 = vector.load %arg9[%c2_115, %c0_116] : memref<20x64xf32, #tpu.memory_space<vmem>>, vector<8x64xf32>
    %130 = tpu.concatenate %127, %128, %129 in 1 : vector<8x64xf32>, vector<8x64xf32>, vector<8x64xf32> -> vector<8x192xf32>
    %c10_117 = arith.constant 10 : index
    %c0_118 = arith.constant 0 : index
    %131 = vector.load %arg9[%c10_117, %c0_118] : memref<20x64xf32, #tpu.memory_space<vmem>>, vector<8x64xf32>
    %c11_119 = arith.constant 11 : index
    %c0_120 = arith.constant 0 : index
    %132 = vector.load %arg9[%c11_119, %c0_120] : memref<20x64xf32, #tpu.memory_space<vmem>>, vector<8x64xf32>
    %c12_121 = arith.constant 12 : index
    %c0_122 = arith.constant 0 : index
    %133 = vector.load %arg9[%c12_121, %c0_122] : memref<20x64xf32, #tpu.memory_space<vmem>>, vector<8x64xf32>
    %134 = tpu.concatenate %131, %132, %133 in 1 : vector<8x64xf32>, vector<8x64xf32>, vector<8x64xf32> -> vector<8x192xf32>
    %135 = tpu.concatenate %130, %134 in 0 : vector<8x192xf32>, vector<8x192xf32> -> vector<16x192xf32>
    %c624 = arith.constant 624 : index
    %c0_123 = arith.constant 0 : index
    %136 = vector.load %arg1[%c624, %c0_123] : memref<1008x128xbf16, #tpu.memory_space<vmem>>, vector<192x64xbf16>
    %137 = arith.truncf %135 : vector<16x192xf32> to vector<16x192xbf16>
    %cst_124 = arith.constant dense<0.000000e+00> : vector<16x64xf32>
    %138 = tpu.matmul %137, %136, %cst_124 {dimension_numbers = #tpu.dot_dimension_numbers<[1], [0], [0], [1], [0, 0, 1, 1], [], []>} : vector<16x192xbf16>, vector<192x64xbf16>, vector<16x64xf32> -> vector<16x64xf32>
    %c4 = arith.constant 4 : index
    %c0_125 = arith.constant 0 : index
    %139 = vector.load %arg2[%c4, %c0_125] : memref<6x128xf32, #tpu.memory_space<vmem>>, vector<1x64xf32>
    %140 = vector.broadcast %139 : vector<1x64xf32> to vector<16x64xf32>
    %141 = arith.addf %138, %140 : vector<16x64xf32>
    %cst_126 = arith.constant 0.000000e+00 : f32
    %142 = vector.broadcast %cst_126 : f32 to vector<16x64xf32>
    %143 = arith.cmpf oge, %141, %142 : vector<16x64xf32>
    %cst_127 = arith.constant 0.00999999977 : f32
    %144 = vector.broadcast %cst_127 : f32 to vector<16x64xf32>
    %145 = arith.mulf %144, %141 : vector<16x64xf32>
    %146 = arith.select %143, %141, %145 : vector<16x64xi1>, vector<16x64xf32>
    %147 = vector.extract_strided_slice %146 {offsets = [0, 0], sizes = [1, 64], strides = [1, 1]} : vector<16x64xf32> to vector<1x64xf32>
    %c1_128 = arith.constant 1 : index
    %c0_129 = arith.constant 0 : index
    %148 = vector.load %arg10[%c1_128, %c0_129] : memref<34x64xf32, #tpu.memory_space<vmem>>, vector<1x64xf32>
    tpu.vector_store %arg10[%c1_128, %c0_129], %147 {strides = array<i32>} : memref<34x64xf32, #tpu.memory_space<vmem>>, vector<1x64xf32>,
    %149 = vector.extract_strided_slice %146 {offsets = [1, 0], sizes = [1, 64], strides = [1, 1]} : vector<16x64xf32> to vector<1x64xf32>
    %c3_130 = arith.constant 3 : index
    %c0_131 = arith.constant 0 : index
    %150 = vector.load %arg10[%c3_130, %c0_131] : memref<34x64xf32, #tpu.memory_space<vmem>>, vector<1x64xf32>
    tpu.vector_store %arg10[%c3_130, %c0_131], %149 {strides = array<i32>} : memref<34x64xf32, #tpu.memory_space<vmem>>, vector<1x64xf32>,
    %151 = vector.extract_strided_slice %146 {offsets = [2, 0], sizes = [1, 64], strides = [1, 1]} : vector<16x64xf32> to vector<1x64xf32>
    %c5_132 = arith.constant 5 : index
    %c0_133 = arith.constant 0 : index
    %152 = vector.load %arg10[%c5_132, %c0_133] : memref<34x64xf32, #tpu.memory_space<vmem>>, vector<1x64xf32>
    tpu.vector_store %arg10[%c5_132, %c0_133], %151 {strides = array<i32>} : memref<34x64xf32, #tpu.memory_space<vmem>>, vector<1x64xf32>,
    %153 = vector.extract_strided_slice %146 {offsets = [3, 0], sizes = [1, 64], strides = [1, 1]} : vector<16x64xf32> to vector<1x64xf32>
    %c7_134 = arith.constant 7 : index
    %c0_135 = arith.constant 0 : index
    %154 = vector.load %arg10[%c7_134, %c0_135] : memref<34x64xf32, #tpu.memory_space<vmem>>, vector<1x64xf32>
    tpu.vector_store %arg10[%c7_134, %c0_135], %153 {strides = array<i32>} : memref<34x64xf32, #tpu.memory_space<vmem>>, vector<1x64xf32>,
    %155 = vector.extract_strided_slice %146 {offsets = [4, 0], sizes = [1, 64], strides = [1, 1]} : vector<16x64xf32> to vector<1x64xf32>
    %c9_136 = arith.constant 9 : index
    %c0_137 = arith.constant 0 : index
    %156 = vector.load %arg10[%c9_136, %c0_137] : memref<34x64xf32, #tpu.memory_space<vmem>>, vector<1x64xf32>
    tpu.vector_store %arg10[%c9_136, %c0_137], %155 {strides = array<i32>} : memref<34x64xf32, #tpu.memory_space<vmem>>, vector<1x64xf32>,
    %157 = vector.extract_strided_slice %146 {offsets = [5, 0], sizes = [1, 64], strides = [1, 1]} : vector<16x64xf32> to vector<1x64xf32>
    %c11_138 = arith.constant 11 : index
    %c0_139 = arith.constant 0 : index
    %158 = vector.load %arg10[%c11_138, %c0_139] : memref<34x64xf32, #tpu.memory_space<vmem>>, vector<1x64xf32>
    tpu.vector_store %arg10[%c11_138, %c0_139], %157 {strides = array<i32>} : memref<34x64xf32, #tpu.memory_space<vmem>>, vector<1x64xf32>,
    %159 = vector.extract_strided_slice %146 {offsets = [6, 0], sizes = [1, 64], strides = [1, 1]} : vector<16x64xf32> to vector<1x64xf32>
    %c13_140 = arith.constant 13 : index
    %c0_141 = arith.constant 0 : index
    %160 = vector.load %arg10[%c13_140, %c0_141] : memref<34x64xf32, #tpu.memory_space<vmem>>, vector<1x64xf32>
    tpu.vector_store %arg10[%c13_140, %c0_141], %159 {strides = array<i32>} : memref<34x64xf32, #tpu.memory_space<vmem>>, vector<1x64xf32>,
    %161 = vector.extract_strided_slice %146 {offsets = [7, 0], sizes = [1, 64], strides = [1, 1]} : vector<16x64xf32> to vector<1x64xf32>
    %c15_142 = arith.constant 15 : index
    %c0_143 = arith.constant 0 : index
    %162 = vector.load %arg10[%c15_142, %c0_143] : memref<34x64xf32, #tpu.memory_space<vmem>>, vector<1x64xf32>
    tpu.vector_store %arg10[%c15_142, %c0_143], %161 {strides = array<i32>} : memref<34x64xf32, #tpu.memory_space<vmem>>, vector<1x64xf32>,
    %163 = vector.extract_strided_slice %146 {offsets = [8, 0], sizes = [1, 64], strides = [1, 1]} : vector<16x64xf32> to vector<1x64xf32>
    %c18_144 = arith.constant 18 : index
    %c0_145 = arith.constant 0 : index
    %164 = vector.load %arg10[%c18_144, %c0_145] : memref<34x64xf32, #tpu.memory_space<vmem>>, vector<1x64xf32>
    tpu.vector_store %arg10[%c18_144, %c0_145], %163 {strides = array<i32>} : memref<34x64xf32, #tpu.memory_space<vmem>>, vector<1x64xf32>,
    %165 = vector.extract_strided_slice %146 {offsets = [9, 0], sizes = [1, 64], strides = [1, 1]} : vector<16x64xf32> to vector<1x64xf32>
    %c20_146 = arith.constant 20 : index
    %c0_147 = arith.constant 0 : index
    %166 = vector.load %arg10[%c20_146, %c0_147] : memref<34x64xf32, #tpu.memory_space<vmem>>, vector<1x64xf32>
    tpu.vector_store %arg10[%c20_146, %c0_147], %165 {strides = array<i32>} : memref<34x64xf32, #tpu.memory_space<vmem>>, vector<1x64xf32>,
    %167 = vector.extract_strided_slice %146 {offsets = [10, 0], sizes = [1, 64], strides = [1, 1]} : vector<16x64xf32> to vector<1x64xf32>
    %c22 = arith.constant 22 : index
    %c0_148 = arith.constant 0 : index
    %168 = vector.load %arg10[%c22, %c0_148] : memref<34x64xf32, #tpu.memory_space<vmem>>, vector<1x64xf32>
    tpu.vector_store %arg10[%c22, %c0_148], %167 {strides = array<i32>} : memref<34x64xf32, #tpu.memory_space<vmem>>, vector<1x64xf32>,
    %169 = vector.extract_strided_slice %146 {offsets = [11, 0], sizes = [1, 64], strides = [1, 1]} : vector<16x64xf32> to vector<1x64xf32>
    %c24 = arith.constant 24 : index
    %c0_149 = arith.constant 0 : index
    %170 = vector.load %arg10[%c24, %c0_149] : memref<34x64xf32, #tpu.memory_space<vmem>>, vector<1x64xf32>
    tpu.vector_store %arg10[%c24, %c0_149], %169 {strides = array<i32>} : memref<34x64xf32, #tpu.memory_space<vmem>>, vector<1x64xf32>,
    %171 = vector.extract_strided_slice %146 {offsets = [12, 0], sizes = [1, 64], strides = [1, 1]} : vector<16x64xf32> to vector<1x64xf32>
    %c26 = arith.constant 26 : index
    %c0_150 = arith.constant 0 : index
    %172 = vector.load %arg10[%c26, %c0_150] : memref<34x64xf32, #tpu.memory_space<vmem>>, vector<1x64xf32>
    tpu.vector_store %arg10[%c26, %c0_150], %171 {strides = array<i32>} : memref<34x64xf32, #tpu.memory_space<vmem>>, vector<1x64xf32>,
    %173 = vector.extract_strided_slice %146 {offsets = [13, 0], sizes = [1, 64], strides = [1, 1]} : vector<16x64xf32> to vector<1x64xf32>
    %c28 = arith.constant 28 : index
    %c0_151 = arith.constant 0 : index
    %174 = vector.load %arg10[%c28, %c0_151] : memref<34x64xf32, #tpu.memory_space<vmem>>, vector<1x64xf32>
    tpu.vector_store %arg10[%c28, %c0_151], %173 {strides = array<i32>} : memref<34x64xf32, #tpu.memory_space<vmem>>, vector<1x64xf32>,
    %175 = vector.extract_strided_slice %146 {offsets = [14, 0], sizes = [1, 64], strides = [1, 1]} : vector<16x64xf32> to vector<1x64xf32>
    %c30 = arith.constant 30 : index
    %c0_152 = arith.constant 0 : index
    %176 = vector.load %arg10[%c30, %c0_152] : memref<34x64xf32, #tpu.memory_space<vmem>>, vector<1x64xf32>
    tpu.vector_store %arg10[%c30, %c0_152], %175 {strides = array<i32>} : memref<34x64xf32, #tpu.memory_space<vmem>>, vector<1x64xf32>,
    %177 = vector.extract_strided_slice %146 {offsets = [15, 0], sizes = [1, 64], strides = [1, 1]} : vector<16x64xf32> to vector<1x64xf32>
    %c32 = arith.constant 32 : index
    %c0_153 = arith.constant 0 : index
    %178 = vector.load %arg10[%c32, %c0_153] : memref<34x64xf32, #tpu.memory_space<vmem>>, vector<1x64xf32>
    tpu.vector_store %arg10[%c32, %c0_153], %177 {strides = array<i32>} : memref<34x64xf32, #tpu.memory_space<vmem>>, vector<1x64xf32>,
    %c0_154 = arith.constant 0 : index
    %c0_155 = arith.constant 0 : index
    %179 = vector.load %arg10[%c0_154, %c0_155] : memref<34x64xf32, #tpu.memory_space<vmem>>, vector<15x64xf32>
    %c1_156 = arith.constant 1 : index
    %c0_157 = arith.constant 0 : index
    %180 = vector.load %arg10[%c1_156, %c0_157] : memref<34x64xf32, #tpu.memory_space<vmem>>, vector<15x64xf32>
    %c2_158 = arith.constant 2 : index
    %c0_159 = arith.constant 0 : index
    %181 = vector.load %arg10[%c2_158, %c0_159] : memref<34x64xf32, #tpu.memory_space<vmem>>, vector<15x64xf32>
    %182 = tpu.concatenate %179, %180, %181 in 1 : vector<15x64xf32>, vector<15x64xf32>, vector<15x64xf32> -> vector<15x192xf32>
    %c17_160 = arith.constant 17 : index
    %c0_161 = arith.constant 0 : index
    %183 = vector.load %arg10[%c17_160, %c0_161] : memref<34x64xf32, #tpu.memory_space<vmem>>, vector<15x64xf32>
    %c18_162 = arith.constant 18 : index
    %c0_163 = arith.constant 0 : index
    %184 = vector.load %arg10[%c18_162, %c0_163] : memref<34x64xf32, #tpu.memory_space<vmem>>, vector<15x64xf32>
    %c19_164 = arith.constant 19 : index
    %c0_165 = arith.constant 0 : index
    %185 = vector.load %arg10[%c19_164, %c0_165] : memref<34x64xf32, #tpu.memory_space<vmem>>, vector<15x64xf32>
    %186 = tpu.concatenate %183, %184, %185 in 1 : vector<15x64xf32>, vector<15x64xf32>, vector<15x64xf32> -> vector<15x192xf32>
    %187 = tpu.concatenate %182, %186 in 0 : vector<15x192xf32>, vector<15x192xf32> -> vector<30x192xf32>
    %c816 = arith.constant 816 : index
    %c0_166 = arith.constant 0 : index
    %188 = vector.load %arg1[%c816, %c0_166] : memref<1008x128xbf16, #tpu.memory_space<vmem>>, vector<192x60xbf16>
    %189 = arith.truncf %187 : vector<30x192xf32> to vector<30x192xbf16>
    %cst_167 = arith.constant dense<0.000000e+00> : vector<30x60xf32>
    %190 = tpu.matmul %189, %188, %cst_167 {dimension_numbers = #tpu.dot_dimension_numbers<[1], [0], [0], [1], [0, 0, 1, 1], [], []>} : vector<30x192xbf16>, vector<192x60xbf16>, vector<30x60xf32> -> vector<30x60xf32>
    %c5_168 = arith.constant 5 : index
    %c0_169 = arith.constant 0 : index
    %191 = vector.load %arg2[%c5_168, %c0_169] : memref<6x128xf32, #tpu.memory_space<vmem>>, vector<1x60xf32>
    %192 = vector.broadcast %191 : vector<1x60xf32> to vector<30x60xf32>
    %193 = arith.addf %190, %192 : vector<30x60xf32>
    %cst_170 = arith.constant 0.000000e+00 : f32
    %194 = vector.broadcast %cst_170 : f32 to vector<30x60xf32>
    %195 = arith.subf %194, %193 : vector<30x60xf32>
    %196 = math.exp %195 : vector<30x60xf32>
    %cst_171 = arith.constant 1.000000e+00 : f32
    %197 = vector.broadcast %cst_171 : f32 to vector<30x60xf32>
    %198 = arith.addf %197, %196 : vector<30x60xf32>
    %199 = tpu.reciprocal %198 {approx = true} : vector<30x60xf32> -> vector<30x60xf32>
    %cst_172 = arith.constant 0.000000e+00 : f32
    %cst_173 = arith.constant 1.000000e+00 : f32
    %200 = vector.broadcast %cst_172 : f32 to vector<30x60xf32>
    %201 = arith.maximumf %200, %199 : vector<30x60xf32>
    %202 = vector.broadcast %cst_173 : f32 to vector<30x60xf32>
    %203 = arith.minimumf %202, %201 : vector<30x60xf32>
    %cst_174 = arith.constant 0.000000e+00 : f32
    %204 = vector.broadcast %cst_174 : f32 to vector<30x68xf32>
    %205 = tpu.concatenate %203, %204 in 1 : vector<30x60xf32>, vector<30x68xf32> -> vector<30x128xf32>
    %c0_175 = arith.constant 0 : index
    %c0_176 = arith.constant 0 : index
    %206 = vector.load %arg3[%c0_175, %c0_176] : memref<30x128xf32, #tpu.memory_space<vmem>>, vector<30x128xf32>
    tpu.vector_store %arg3[%c0_175, %c0_176], %205 {strides = array<i32>} : memref<30x128xf32, #tpu.memory_space<vmem>>, vector<30x128xf32>,
    return
  }
}

</mosaic_0001>

<bundles_post_ra>
// kernel: _lambda_.1
= control target key start
LH: loop header
LB: loop body
LE: loop exit
PB: predicated region body
PF: predicated region fallthrough
CT: control target
= control target key end

     0   :  { %vm17_vm0 = vcmask 523264   ;;  %vm22_vm1 = vcmask 519168   ;;  %v1354_v0 = vmov 0.0   ;;  %v1355_v4 = vmov 0   ;;  %s1356_s28 = smov 64   ;;  %s1358_s5 = smov 32   ;;  %s1793_s0 = inlined_call_operand.vmem [shape: f32[32,64], index: 0, kind: input, shape index: {}]   ;;  %s1794_s1 = inlined_call_operand.vmem [shape: bf16[1008,128], index: 1, kind: input, shape index: {}]   ;;  %s1795_s2 = inlined_call_operand.vmem [shape: f32[6,128], index: 2, kind: input, shape index: {}]   ;;  %s1796_s4 = inlined_call_operand.vmem [shape: f32[4,128], index: 4, kind: output, shape index: {1}]   ;;  %s1797_s3 = inlined_call_operand.vmem [shape: f32[30,128], index: 3, kind: output, shape index: {0}]  }
   0x1   :  { %18 = vst.msk [vmem:[#allocation2] sm:$0xff] %vm17_vm0, %v1354_v0  ;;  %19 = vst.msk [vmem:[#allocation2 + $0x8] sm:$0xff] %vm17_vm0, %v1354_v0  ;;  %v42_v1 = vld [vmem:[%s1793_s0] sm:$0xff]  ;;  %v43_v2 = vld [vmem:[%s1793_s0 + $0x8] sm:$0xff]  ;;  %177 = vmatprep.subr.bf16.mxu0 %v1355_v4  ;;  %362 = vmatprep.subr.bf16.mxu1 %v1355_v4  ;;  %vm253_vm4 = vcmask 1043456   ;;  %vm406_vm6 = vcmask 523268  }
   0x2   :  { %20 = vst.msk [vmem:[#allocation2 + $0x10] sm:$0xff] %vm17_vm0, %v1354_v0  ;;  %21 = vst.msk [vmem:[#allocation2 + $0x18] sm:$0xff] %vm17_vm0, %v1354_v0  ;;  %v44_v3 = vld [vmem:[%s1793_s0 + $0x10] sm:$0xff]  ;;  %v45_v5 = vld [vmem:[%s1793_s0 + $0x18] sm:$0xff]  ;;  %vm29_vm7 = vcmask 130048   ;;  %vm31_vm8 = vcmask 125952  }
   0x3   :  { %23 = vst.msk [vmem:[#allocation2 + $0x20] sm:$0xf] %vm22_vm1, %v1354_v0  ;;  %26 = vst.msk [vmem:[#allocation3 + $0x10] sm:$0xf] %vm22_vm1, %v1354_v0  ;;  %v1275_v6 = vld [vmem:[%s1794_s1] sm:$0xff]   ;;  %v1276_v7 = vld [vmem:[%s1794_s1 + $0x8] sm:$0xff]  }
   0x4   :  { %24 = vst.msk [vmem:[#allocation3] sm:$0xff] %vm17_vm0, %v1354_v0  ;;  %25 = vst.msk [vmem:[#allocation3 + $0x8] sm:$0xff] %vm17_vm0, %v1354_v0  ;;  %178 = vmatpush1.bf16.msra.mxu0 %v1275_v6  ;;  %v1277_v9 = vld [vmem:[%s1794_s1 + $0x10] sm:$0xff]   ;;  %v1278_v12 = vld [vmem:[%s1794_s1 + $0x18] sm:$0xff]   ;;  %vm435_vm9 = vcmask 1041408   ;;  %vm586_vm10 = vcmask 122880  }
   0x5   :  { %27 = vst.msk [vmem:[#allocation4] sm:$0xff] %vm17_vm0, %v1354_v0  ;;  %33 = vst.msk [vmem:[#allocation6] sm:$0xff] %vm17_vm0, %v1354_v0  ;;  %179 = vmatprep.subr.bf16.mxu0 %v1355_v4  ;;  %v1279_v15 = vld [vmem:[%s1794_s1 + $0x20] sm:$0xff]   ;;  %v1280_v17 = vld [vmem:[%s1794_s1 + $0x28] sm:$0xff]   ;;  %vm588_vm11 = vcmask 123905   ;;  %vm590_vm12 = vcmask 124930  }
   0x6   :  { %28 = vst.msk [vmem:[#allocation4 + $0x8] sm:$0xf] %vm22_vm1, %v1354_v0  ;;  %35 = vst.msk [vmem:[#allocation6 + $0x10] sm:$0xf] %vm22_vm1, %v1354_v0  ;;  %v1281_v18 = vld [vmem:[%s1794_s1 + $0x30] sm:$0xff]   ;;  %v1282_v19 = vld [vmem:[%s1794_s1 + $0x38] sm:$0xff]  }
   0x7   :  { %34 = vst.msk [vmem:[#allocation6 + $0x8] sm:$0xff] %vm17_vm0, %v1354_v0  ;;  %36 = vst.msk [vmem:[#allocation7] sm:$0xff] %vm17_vm0, %v1354_v0  ;;  %v1283_v20 = vld [vmem:[%s1794_s1 + $0x40] sm:$0xff]   ;;  %v1284_v21 = vld [vmem:[%s1794_s1 + $0x48] sm:$0xff]   ;;  %vm592_vm13 = vcmask 125955   ;;  %vm1357_vm14 = vmmov 0  }
   0x8   :  { %37 = vst.msk [vmem:[#allocation7 + $0x8] sm:$0xff] %vm17_vm0, %v1354_v0  ;;  %38 = vst.msk [vmem:[#allocation7 + $0x10] sm:$0xff] %vm17_vm0, %v1354_v0  ;;  %180 = vmatpush1.bf16.msra.mxu0 %v1276_v7  ;;  %v1285_v22 = vld [vmem:[%s1794_s1 + $0x50] sm:$0xff]   ;;  %v1286_v23 = vld [vmem:[%s1794_s1 + $0x58] sm:$0xff]   ;;  %vm606_vm15 = vcmask 261120  }
   0x9   :  { %39 = vst.msk [vmem:[#allocation7 + $0x18] sm:$0xff] %vm17_vm0, %v1354_v0  ;;  %46 = vst.msk [vmem:[#allocation2 + $0x1] sm:$0xff] %vm17_vm0, %v42_v1  ;;  %181 = vmatprep.subr.bf16.mxu0 %v1355_v4  ;;  %v1287_v32 = vld [vmem:[%s1794_s1 + $0x60] sm:$0xff]   ;;  %v1288_v33 = vld [vmem:[%s1794_s1 + $0x68] sm:$0xff]  }
   0xa   :  { %47 = vst.msk [vmem:[#allocation2 + $0x9] sm:$0xff] %vm17_vm0, %v43_v2  ;;  %48 = vst.msk [vmem:[#allocation2 + $0x13] sm:$0xff] %vm17_vm0, %v44_v3  ;;  %363 = vmatpush1.bf16.msra.mxu1 %v1287_v32  ;;  %v1289_v34 = vld [vmem:[%s1794_s1 + $0x70] sm:$0xff]   ;;  %v1290_v35 = vld [vmem:[%s1794_s1 + $0x78] sm:$0xff]  }
   0xb   :  { %49 = vst.msk [vmem:[#allocation2 + $0x1b] sm:$0xff] %vm17_vm0, %v45_v5  ;;  %364 = vmatprep.subr.bf16.mxu1 %v1355_v4  ;;  %v1291_v36 = vld [vmem:[%s1794_s1 + $0x80] sm:$0xff]   ;;  %v1292_v37 = vld [vmem:[%s1794_s1 + $0x88] sm:$0xff]   ;;  %v1293_v38 = vld [vmem:[%s1794_s1 + $0x90] sm:$0xff]  }
   0xc   :  { %182 = vmatpush1.bf16.msra.mxu0 %v1277_v9  ;;  %v1294_v39 = vld [vmem:[%s1794_s1 + $0x98] sm:$0xff]   ;;  %v1295_v40 = vld [vmem:[%s1794_s1 + $0xa0] sm:$0xff]   ;;  %v1296_v41 = vld [vmem:[%s1794_s1 + $0xa8] sm:$0xff]   ;;  %30 = vst.msk [vmem:[#allocation5] sm:$0xff] %vm29_vm7, %v1354_v0 }
   0xd   :  { %183 = vmatprep.subr.bf16.mxu0 %v1355_v4  ;;  %v1159_v42 = vld [vmem:[%s1795_s2] ss:$0 sm:$0xff]  ;;  %v1297_v46 = vld [vmem:[%s1794_s1 + $0xb0] sm:$0xff]   ;;  %v1298_v51 = vld [vmem:[%s1794_s1 + $0xb8] sm:$0xff]   ;;  %32 = vst.msk [vmem:[#allocation5 + $0x8] sm:$0xf] %vm31_vm8, %v1354_v0 }
   0xe   :  { %365 = vmatpush1.bf16.msra.mxu1 %v1288_v33  ;;  %v1299_v9 = vld [vmem:[%s1794_s1 + $0xc0] sm:$0xff]  }
   0xf   :  { %366 = vmatprep.subr.bf16.mxu1 %v1355_v4 }
  0x10   :  { %184 = vmatpush1.bf16.msra.mxu0 %v1278_v12  ;;  %v1302_v12 = vld [vmem:[%s1794_s1 + $0xd8] sm:$0xff]  }
  0x11   :  { %v52_v8 = vld [vmem:[#allocation2 + $0x1] ss:$2 sm:$0xff]  ;;  %v54_v13 = vld [vmem:[#allocation2 + $0x2] ss:$2 sm:$0xff]  ;;  %185 = vmatprep.subr.bf16.mxu0 %v1355_v4 }
  0x12   :  { %v63_v10 = vld [vmem:[#allocation2 + $0x13] ss:$2 sm:$0xff]  ;;  %v65_v14 = vld [vmem:[#allocation2 + $0x14] ss:$2 sm:$0xff]  ;;  %367 = vmatpush1.bf16.msra.mxu1 %v1289_v34 }
  0x13   :  { %v1255_v11 = vpack.i.bf16 %v63_v10, %v52_v8  ;;  %v96_v16 = vpack.c.bf16 %v65_v14, %v54_v13  ;;  %v50_v25 = vld [vmem:[#allocation2] ss:$2 sm:$0xff]  ;;  %368 = vmatprep.subr.bf16.mxu1 %v1355_v4 }
  0x14   :  { %186 = vmatpush1.bf16.msra.mxu0 %v1279_v15  ;;  %v61_v26 = vld [vmem:[#allocation2 + $0x12] ss:$2 sm:$0xff]  ;;  %v1300_v10 = vld [vmem:[%s1794_s1 + $0xc8] sm:$0xff]  }
  0x15   :  { %1256 = vrot.lane.b32.xlu0 %v1255_v11, %s1356_s28  ;;  %1172 = vmatprep.mubr.msk.bf16.mxu0 %vm17_vm0, %v96_v16  ;;  %v1301_v11 = vld [vmem:[%s1794_s1 + $0xd0] sm:$0xff]   ;;  %v1303_v13 = vld [vmem:[%s1794_s1 + $0xe0] sm:$0xff]   ;;  %v1304_v14 = vld [vmem:[%s1794_s1 + $0xe8] sm:$0xff]  }
  0x16   :  { %187 = vmatprep.subr.bf16.mxu0 %v1355_v4  ;;  %369 = vmatpush1.bf16.msra.mxu1 %v1290_v35  ;;  %v1305_v15 = vld [vmem:[%s1794_s1 + $0xf0] sm:$0xff]   ;;  %v1306_v16 = vld [vmem:[%s1794_s1 + $0xf8] sm:$0xff]  }
  0x17   :  { %370 = vmatprep.subr.bf16.mxu1 %v1355_v4 }
  0x18   :  { %188 = vmatpush1.bf16.msra.mxu0 %v1280_v17  ;;  %v1307_v17 = vld [vmem:[%s1794_s1 + $0x100] sm:$0xff]  }
  0x19   :  { %189 = vmatprep.subr.bf16.mxu0 %v1355_v4 }
  0x1a   :  { %371 = vmatpush1.bf16.msra.mxu1 %v1291_v36 }
  0x1b   :  { %372 = vmatprep.subr.bf16.mxu1 %v1355_v4 }
  0x1c   :  { %190 = vmatpush1.bf16.msra.mxu0 %v1281_v18  ;;  %v1308_v18 = vld [vmem:[%s1794_s1 + $0x108] sm:$0xff]  }
  0x1d   :  { %191 = vmatprep.subr.bf16.mxu0 %v1355_v4 }
  0x1e   :  { %373 = vmatpush1.bf16.msra.mxu1 %v1292_v37 }
  0x1f   :  { %374 = vmatprep.subr.bf16.mxu1 %v1355_v4 }
  0x20   :  { %192 = vmatpush1.bf16.msra.mxu0 %v1282_v19  ;;  %v1309_v19 = vld [vmem:[%s1794_s1 + $0x110] sm:$0xff]  }
  0x21   :  { %193 = vmatprep.subr.bf16.mxu0 %v1355_v4 }
  0x22   :  { %375 = vmatpush1.bf16.msra.mxu1 %v1293_v38 }
  0x23   :  { %376 = vmatprep.subr.bf16.mxu1 %v1355_v4 }
  0x24   :  { %194 = vmatpush1.bf16.msra.mxu0 %v1283_v20  ;;  %v1173_v20 = vld [vmem:[%s1795_s2 + $0x1] ss:$0 sm:$0xff] }
  0x25   :  { %195 = vmatprep.subr.bf16.mxu0 %v1355_v4 }
  0x26   :  { %377 = vmatpush1.bf16.msra.mxu1 %v1294_v39 }
  0x27   :  { %378 = vmatprep.subr.bf16.mxu1 %v1355_v4 }
  0x28   :  { %196 = vmatpush1.bf16.msra.mxu0 %v1284_v21 }
  0x29   :  { %197 = vmatprep.subr.bf16.mxu0 %v1355_v4 }
  0x2a   :  { %379 = vmatpush1.bf16.msra.mxu1 %v1295_v40 }
  0x2b   :  { %380 = vmatprep.subr.bf16.mxu1 %v1355_v4 }
  0x2c   :  { %198 = vmatpush1.bf16.msra.mxu0 %v1285_v22 }
  0x2d   :  { %199 = vmatprep.subr.bf16.mxu0 %v1355_v4 }
  0x2e   :  { %381 = vmatpush1.bf16.msra.mxu1 %v1296_v41 }
  0x2f   :  { %382 = vmatprep.subr.bf16.mxu1 %v1355_v4 }
  0x30   :  { %200 = vmatpush1.bf16.msra.mxu0 %v1286_v23 }
  0x31   :  { %544 = vmatprep.subr.bf16.mxu0 %v1355_v4 }
  0x32   :  { %383 = vmatpush1.bf16.msra.mxu1 %v1297_v46  ;;  %v1187_v46 = vld [vmem:[%s1795_s2 + $0x2] ss:$0 sm:$0xff] }
  0x33   :  { %384 = vmatprep.subr.bf16.mxu1 %v1355_v4 }
  0x36   :  { %385 = vmatpush1.bf16.msra.mxu1 %v1298_v51  ;;  %v1312_v51 = vld [vmem:[%s1794_s1 + $0x128] sm:$0xff]  }
  0x37   :  { %1239 = vmatprep.subr.bf16.mxu1 %v1354_v0 }
  0x87   :  { %v1257_v24 = vpop.permute.xlu0 %1256 }
  0x88   :  { %v1259_v27 = vunpack.i.h.bf16 %v1257_v24  ;;  %v1258_v28 = vunpack.i.l.bf16 %v1257_v24 }
  0x8a   :  { %v59_v29 = vsel %vm17_vm0, %v50_v25, %v1258_v28  ;;  %v70_v30 = vsel %vm17_vm0, %v61_v26, %v1259_v27  ;;  %v1310_v28 = vld [vmem:[%s1794_s1 + $0x118] sm:$0xff]  }
  0x8b   :  { %v95_v31 = vpack.c.bf16 %v70_v30, %v59_v29 }
  0x8d   :  { %210 = vmatmul.mubr.bf16.vlgmr.msra.gmra.mrb[0].mxu0 %v95_v31 }
  0x8e   :  { %545 = vmatpush1.bf16.msra.mxu0 %v1299_v9 }
  0x8f   :  { %546 = vmatprep.subr.bf16.mxu0 %v1355_v4 }
  0x92   :  { %547 = vmatpush1.bf16.msra.mxu0 %v1300_v10 }
  0x93   :  { %548 = vmatprep.subr.bf16.mxu0 %v1355_v4 }
  0x96   :  { %549 = vmatpush1.bf16.msra.mxu0 %v1301_v11 }
  0x97   :  { %550 = vmatprep.subr.bf16.mxu0 %v1355_v4 }
  0x9a   :  { %551 = vmatpush1.bf16.msra.mxu0 %v1302_v12  ;;  %v1314_v12 = vld [vmem:[%s1794_s1 + $0x138] sm:$0xff]  }
  0x9b   :  { %552 = vmatprep.subr.bf16.mxu0 %v1355_v4 }
  0x9e   :  { %553 = vmatpush1.bf16.msra.mxu0 %v1303_v13  ;;  %v1315_v13 = vld [vmem:[%s1794_s1 + $0x140] sm:$0xff]  }
  0x9f   :  { %554 = vmatprep.subr.bf16.mxu0 %v1355_v4 }
  0xa2   :  { %555 = vmatpush1.bf16.msra.mxu0 %v1304_v14  ;;  %v1316_v14 = vld [vmem:[%s1794_s1 + $0x148] sm:$0xff]  }
  0xa3   :  { %556 = vmatprep.subr.bf16.mxu0 %v1355_v4 }
  0xa6   :  { %557 = vmatpush1.bf16.msra.mxu0 %v1305_v15  ;;  %v1317_v15 = vld [vmem:[%s1794_s1 + $0x150] sm:$0xff]  }
  0xa7   :  { %558 = vmatprep.subr.bf16.mxu0 %v1355_v4 }
  0xaa   :  { %559 = vmatpush1.bf16.msra.mxu0 %v1306_v16  ;;  %v1318_v16 = vld [vmem:[%s1794_s1 + $0x158] sm:$0xff]  }
  0xab   :  { %560 = vmatprep.subr.bf16.mxu0 %v1355_v4 }
  0xae   :  { %561 = vmatpush1.bf16.msra.mxu0 %v1307_v17  ;;  %v1319_v17 = vld [vmem:[%s1794_s1 + $0x160] sm:$0xff]  }
  0xaf   :  { %562 = vmatprep.subr.bf16.mxu0 %v1355_v4 }
  0xb2   :  { %563 = vmatpush1.bf16.msra.mxu0 %v1308_v18  ;;  %v1320_v18 = vld [vmem:[%s1794_s1 + $0x168] sm:$0xff]  }
  0xb3   :  { %564 = vmatprep.subr.bf16.mxu0 %v1355_v4 }
  0xb6   :  { %565 = vmatpush1.bf16.msra.mxu0 %v1309_v19  ;;  %v1321_v19 = vld [vmem:[%s1794_s1 + $0x170] sm:$0xff]  }
  0xb7   :  { %566 = vmatprep.subr.bf16.mxu0 %v1355_v4 }
  0xba   :  { %567 = vmatpush1.bf16.msra.mxu0 %v1310_v28 }
  0xbb   :  { %1065 = vmatprep.subr.bf16.mxu0 %v1355_v4 }
 0x160   :  { %v211_v43 = vpop.f32.mrb[0].mxu0 }
 0x161   :  { %v212_v44 = vadd.f32 %v1159_v42, %v211_v43  ;;  %v213_v45 = vpop.f32.mrb[1].mxu0 }
 0x162   :  { %v214_v47 = vpop.f32.mrb[2].mxu0  ;;  %v1311_v45 = vld [vmem:[%s1794_s1 + $0x120] sm:$0xff]  }
 0x163   :  { %vm218_vm2 = vcmp.ge.f32.partialorder %v212_v44, 0.0  ;;  %v220_v48 = vmul.f32 0.01, %v212_v44  ;;  %v215_v49 = vadd.f32 %v1159_v42, %v214_v47  ;;  %v216_v50 = vpop.f32.mrb[3].mxu0 }
 0x165   :  { %v222_v52 = vsel %vm218_vm2, %v212_v44, %v220_v48  ;;  %vm219_vm3 = vcmp.ge.f32.partialorder %v215_v49, 0.0  ;;  %v221_v53 = vmul.f32 0.01, %v215_v49  ;;  %vm702_vm2 = vcmask 516096  }
 0x166   :  { %224 = vst.msk [vmem:[#allocation3 + $0x1] sm:$0xff] %vm17_vm0, %v222_v52 }
 0x167   :  { %v223_v54 = vsel %vm219_vm3, %v215_v49, %v221_v53  ;;  %vm704_vm3 = vcmask 517121  }
 0x168   :  { %225 = vst.msk [vmem:[#allocation3 + $0xb] sm:$0xff] %vm17_vm0, %v223_v54  ;;  %v1313_v54 = vld [vmem:[%s1794_s1 + $0x130] sm:$0xff]  }
 0x16d   :  { %v228_v55 = vld [vmem:[#allocation3 + $0x1] ss:$2 sm:$0xf]  ;;  %v230_v59 = vld [vmem:[#allocation3 + $0x2] ss:$2 sm:$0xf] }
 0x16e   :  { %232 = vrot.lane.b32.xlu1 %v228_v55, %s1356_s28  ;;  %v226_v3 = vld [vmem:[#allocation3] ss:$2 sm:$0xf] }
 0x16f   :  { %v239_v56 = vld [vmem:[#allocation3 + $0xb] ss:$2 sm:$0xf]  ;;  %v241_v57 = vld [vmem:[#allocation3 + $0xc] ss:$2 sm:$0xf] }
 0x170   :  { %243 = vrot.lane.b32.xlu0 %v239_v56, %s1356_s28  ;;  %v250_v58 = vrot.slane %v241_v57, 4  ;;  %v237_v1 = vld [vmem:[#allocation3 + $0xa] ss:$2 sm:$0xf] }
 0x172   :  { %v255_v60 = vsel %vm253_vm4, %v230_v59, %v250_v58 }
 0x173   :  { %v281_v61 = vpack.c.bf16 %v255_v60, %v255_v60 }
 0x175   :  { %1186 = vmatprep.mubr.msk.bf16.mxu1 %vm17_vm0, %v281_v61 }
 0x1e0   :  { %v233_v62 = vpop.permute.xlu1 %232 }
 0x1e1   :  { %v235_v6 = vsel %vm17_vm0, %v226_v3, %v233_v62 }
 0x1e2   :  { %v244_v63 = vpop.permute.xlu0 %243 }
 0x1e3   :  { %v246_v2 = vsel %vm17_vm0, %v237_v1, %v244_v63 }
 0x1e4   :  { %v249_v5 = vrot.slane %v246_v2, 4 }
 0x1e6   :  { %v254_v7 = vsel %vm253_vm4, %v235_v6, %v249_v5 }
 0x1e7   :  { %v280_v8 = vpack.c.bf16 %v254_v7, %v254_v7 }
 0x1e9   :  { %395 = vmatmul.mubr.bf16.vlgmr.msra.gmra.mrb[0].mxu1 %v280_v8 }
 0x1ea   :  { %1240 = vmatpush3.bf16.msra.mxu1 %v1311_v45  ;;  %1245 = vmatprep.mubr.msk.bf16.mxu1 %vm1357_vm14, %v1354_v0  ;;  %vm939_vm14 = vcmask 1046528  }
 0x1eb   :  { %1241 = vmatprep.subr.bf16.mxu1 %v1354_v0 }
 0x1ee   :  { %1242 = vmatpush3.bf16.msra.mxu1 %v1312_v51  ;;  %v1332_v51 = vld [vmem:[%s1794_s1 + $0x1c8] sm:$0xff]  }
 0x1ef   :  { %1243 = vmatprep.subr.bf16.mxu1 %v1354_v0 }
 0x1f2   :  { %1244 = vmatpush3.bf16.msra.mxu1 %v1313_v54  ;;  %v1206_v54 = vld [vmem:[%s1795_s2 + $0x4] ss:$0 sm:$0xff] }
 0x1f3   :  { %840 = vmatprep.subr.bf16.mxu1 %v1355_v4 }
 0x2bc   :  { %v396_v21 = vpop.f32.mrb[0].mxu1 }
 0x2bd   :  { %v397_v22 = vadd.f32 %v1173_v20, %v396_v21  ;;  %v398_v23 = vpop.f32.mrb[1].mxu1  ;;  %v1322_v20 = vld [vmem:[%s1794_s1 + $0x178] sm:$0xff]   ;;  %v1323_v21 = vld [vmem:[%s1794_s1 + $0x180] sm:$0xff]  }
 0x2be   :  { %v399_v24 = vpop.f32.mrb[2].mxu1  ;;  %v1201_v23 = vld [vmem:[%s1795_s2 + $0x3] ss:$0 sm:$0xff] }
 0x2bf   :  { %vm402_vm5 = vcmp.ge.f32.partialorder %v397_v22, 0.0  ;;  %v403_v25 = vmul.f32 0.01, %v397_v22  ;;  %v400_v26 = vpop.f32.mrb[3].mxu1 }
 0x2c1   :  { %v404_v27 = vsel %vm402_vm5, %v397_v22, %v403_v25  ;;  %v1324_v22 = vld [vmem:[%s1794_s1 + $0x188] sm:$0xff]   ;;  %vm708_vm5 = vcmask 519171  }
 0x2c2   :  { %405 = vst.msk [vmem:[#allocation4 + $0x1] sm:$0xf] %vm22_vm1, %v404_v27  ;;  %vm655_vm1 = vcmask 392192  }
 0x2c3   :  { %407 = vst.msk [vmem:[#allocation4 + $0x3] sm:$0xf0] %vm406_vm6, %v404_v27  ;;  %vm710_vm6 = vcmask 520196  }
 0x2c9   :  { %v410_v30 = vld [vmem:[#allocation4 + $0x1] ss:$2 sm:$0x3]  ;;  %v412_v33 = vld [vmem:[#allocation4 + $0x2] ss:$2 sm:$0x3] }
 0x2ca   :  { %v421_v29 = vld [vmem:[#allocation4 + $0x7] ss:$2 sm:$0x3]  ;;  %414 = vrot.lane.b32.xlu0 %v410_v30, %s1356_s28  ;;  %v423_v31 = vld [vmem:[#allocation4 + $0x8] ss:$2 sm:$0x3] }
 0x2cb   :  { %425 = vrot.lane.b32.xlu1 %v421_v29, %s1356_s28  ;;  %v432_v32 = vrot.slane %v423_v31, 6  ;;  %v419_v37 = vld [vmem:[#allocation4 + $0x6] ss:$2 sm:$0x3]  ;;  %v1325_v31 = vld [vmem:[%s1794_s1 + $0x190] sm:$0xff]  }
 0x2cc   :  { %v408_v41 = vld [vmem:[#allocation4] ss:$2 sm:$0x3] }
 0x2cd   :  { %v437_v34 = vsel %vm435_vm9, %v412_v33, %v432_v32 }
 0x2ce   :  { %v463_v35 = vpack.c.bf16 %v437_v34, %v437_v34 }
 0x2d0   :  { %1200 = vmatprep.mubr.msk.bf16.mxu0 %vm17_vm0, %v463_v35 }
 0x33c   :  { %v415_v38 = vpop.permute.xlu0 %414 }
 0x33d   :  { %v426_v36 = vpop.permute.xlu1 %425  ;;  %v417_v42 = vsel %vm17_vm0, %v408_v41, %v415_v38 }
 0x33e   :  { %v428_v39 = vsel %vm17_vm0, %v419_v37, %v426_v36 }
 0x33f   :  { %v431_v40 = vrot.slane %v428_v39, 6 }
 0x341   :  { %v436_v43 = vsel %vm435_vm9, %v417_v42, %v431_v40  ;;  %vm714_vm9 = vcmask 522246  }
 0x342   :  { %v462_v44 = vpack.c.bf16 %v436_v43, %v436_v43 }
 0x344   :  { %577 = vmatmul.mubr.bf16.vlgmr.msra.gmra.mrb[4].mxu0 %v462_v44 }
 0x417   :  { %v578_v47 = vpop.f32.mrb[4].mxu0 }
 0x418   :  { %v579_v48 = vadd.f32 %v1187_v46, %v578_v47  ;;  %v580_v49 = vpop.f32.mrb[5].mxu0  ;;  %v1326_v46 = vld [vmem:[%s1794_s1 + $0x198] sm:$0xff]   ;;  %v1327_v47 = vld [vmem:[%s1794_s1 + $0x1a0] sm:$0xff]  }
 0x419   :  { %v581_v50 = vpop.f32.mrb[6].mxu0  ;;  %1066 = vmatpush1.bf16.msra.mxu0 %v1326_v46  ;;  %v1330_v49 = vld [vmem:[%s1794_s1 + $0x1b8] sm:$0xff]  }
 0x41a   :  { %v584_v52 = vsel %vm29_vm7, %v579_v48, 0.0  ;;  %587 = vst.msk [vmem:[#allocation5 + $0x1] sm:$0x1] %vm586_vm10, %v579_v48  ;;  %v582_v53 = vpop.f32.mrb[7].mxu0  ;;  %vm716_vm10 = vcmask 523271   ;;  %1067 = vmatprep.subr.bf16.mxu0 %v1355_v4  ;;  %v1331_v50 = vld [vmem:[%s1794_s1 + $0x1c0] sm:$0xff]  }
 0x41b   :  { %589 = vst.msk [vmem:[#allocation5 + $0x2] sm:$0x2] %vm588_vm11, %v579_v48  ;;  %585 = vst [vmem:[%s1796_s4] sm:$0xf] %v584_v52  ;;  %s1359_s4 = smov 16   ;;  %vm40_vm11 = vcmask 517120   ;;  %v1333_v52 = vld [vmem:[%s1794_s1 + $0x1d0] sm:$0xff]  }
 0x41c   :  { %591 = vst.msk [vmem:[#allocation5 + $0x5] sm:$0x4] %vm590_vm12, %v579_v48  ;;  %v1334_v53 = vld [vmem:[%s1794_s1 + $0x1d8] sm:$0xff]  }
 0x41d   :  { %593 = vst.msk [vmem:[#allocation5 + $0x6] sm:$0x8] %vm592_vm13, %v579_v48  ;;  %1068 = vmatpush1.bf16.msra.mxu0 %v1327_v47  ;;  %v1328_v48 = vld [vmem:[%s1794_s1 + $0x1a8] sm:$0xff]  }
 0x41e   :  { %41 = vst.msk [vmem:[#allocation7 + $0x20] sm:$0x3] %vm40_vm11, %v1354_v0  ;;  %1069 = vmatprep.subr.bf16.mxu0 %v1355_v4  ;;  %v1329_v0 = vld [vmem:[%s1794_s1 + $0x1b0] sm:$0xff]  }
 0x421   :  { %1070 = vmatpush1.bf16.msra.mxu0 %v1328_v48 }
 0x422   :  { %v595_v56 = vld [vmem:[#allocation5 + $0x1] sm:$0xf]  ;;  %1071 = vmatprep.subr.bf16.mxu0 %v1355_v4 }
 0x423   :  { %v596_v59 = vld [vmem:[#allocation5 + $0x2] sm:$0xf] }
 0x424   :  { %v610_v55 = vld [vmem:[#allocation5 + $0x8] sm:$0xf]  ;;  %v594_v1 = vld [vmem:[#allocation5] sm:$0xf] }
 0x425   :  { %v609_v57 = vld [vmem:[#allocation5 + $0x7] sm:$0xf]  ;;  %616 = vrot.lane.b32.xlu0 %v610_v55, %s1358_s5  ;;  %1072 = vmatpush1.bf16.msra.mxu0 %v1329_v0 }
 0x426   :  { %v1260_v58 = vpack.i.bf16 %v595_v56, %v609_v57  ;;  %v608_v63 = vld [vmem:[#allocation5 + $0x6] sm:$0xf]  ;;  %1073 = vmatprep.subr.bf16.mxu0 %v1355_v4 }
 0x428   :  { %1261 = vrot.lane.b32.xlu1 %v1260_v58, %s1359_s4  ;;  %v1335_v58 = vld [vmem:[%s1794_s1 + $0x1e0] sm:$0xff]  }
 0x429   :  { %1074 = vmatpush1.bf16.msra.mxu0 %v1330_v49 }
 0x42a   :  { %1075 = vmatprep.subr.bf16.mxu0 %v1355_v4 }
 0x42c   :  { %602 = vrot.lane.b32.xlu1 %v596_v59, %s1358_s5 }
 0x42d   :  { %1076 = vmatpush1.bf16.msra.mxu0 %v1331_v50 }
 0x42e   :  { %1077 = vmatprep.subr.bf16.mxu0 %v1355_v4 }
 0x431   :  { %1078 = vmatpush1.bf16.msra.mxu0 %v1332_v51 }
 0x432   :  { %1079 = vmatprep.subr.bf16.mxu0 %v1355_v4 }
 0x435   :  { %1080 = vmatpush1.bf16.msra.mxu0 %v1333_v52 }
 0x436   :  { %1081 = vmatprep.subr.bf16.mxu0 %v1355_v4 }
 0x439   :  { %1082 = vmatpush1.bf16.msra.mxu0 %v1334_v53 }
 0x43a   :  { %1083 = vmatprep.subr.bf16.mxu0 %v1355_v4 }
 0x43d   :  { %1084 = vmatpush1.bf16.msra.mxu0 %v1335_v58 }
 0x43e   :  { %1085 = vmatprep.subr.bf16.mxu0 %v1355_v4 }
 0x497   :  { %v617_v2 = vpop.permute.xlu0 %616 }
 0x49a   :  { %v1262_v60 = vpop.permute.xlu1 %1261 }
 0x49b   :  { %v1264_v61 = vunpack.i.h.bf16 %v1262_v60  ;;  %v1263_v62 = vunpack.i.l.bf16 %v1262_v60 }
 0x49d   :  { %v619_v3 = vsel %vm29_vm7, %v608_v63, %v1263_v62  ;;  %v605_v5 = vsel %vm29_vm7, %v594_v1, %v1264_v61  ;;  %vm712_vm7 = vcmask 521221  }
 0x49e   :  { %v603_v6 = vpop.permute.xlu1 %602  ;;  %v620_v7 = vsel %vm606_vm15, %v619_v3, %v617_v2  ;;  %v1336_v2 = vld [vmem:[%s1794_s1 + $0x1e8] sm:$0xff]  }
 0x49f   :  { %v607_v8 = vsel %vm606_vm15, %v605_v5, %v603_v6  ;;  %v622_v9 = vrot.slane %v620_v7, 4  ;;  %1086 = vmatpush1.bf16.msra.mxu0 %v1336_v2  ;;  %v1337_v5 = vld [vmem:[%s1794_s1 + $0x1f0] sm:$0xff]  }
 0x4a0   :  { %1087 = vmatprep.subr.bf16.mxu0 %v1355_v4 }
 0x4a1   :  { %v624_v10 = vsel %vm253_vm4, %v607_v8, %v622_v9  ;;  %vm706_vm4 = vcmask 518146  }
 0x4a2   :  { %v631_v11 = vpack.c.bf16 %v624_v10, %v624_v10 }
 0x4a3   :  { %1088 = vmatpush1.bf16.msra.mxu0 %v1337_v5 }
 0x4a4   :  { %1246 = vmatmul.mubr.msk.bf16.vlgmr.msra.gmra.mrb[4].mxu1 %vm655_vm1, %v631_v11 }
 0x4a5   :  { %841 = vmatpush1.bf16.msra.mxu1 %v1314_v12 }
 0x4a6   :  { %842 = vmatprep.subr.bf16.mxu1 %v1355_v4 }
 0x4a9   :  { %843 = vmatpush1.bf16.msra.mxu1 %v1315_v13 }
 0x4aa   :  { %844 = vmatprep.subr.bf16.mxu1 %v1355_v4 }
 0x4ad   :  { %845 = vmatpush1.bf16.msra.mxu1 %v1316_v14 }
 0x4ae   :  { %846 = vmatprep.subr.bf16.mxu1 %v1355_v4 }
 0x4b1   :  { %847 = vmatpush1.bf16.msra.mxu1 %v1317_v15 }
 0x4b2   :  { %848 = vmatprep.subr.bf16.mxu1 %v1355_v4 }
 0x4b5   :  { %849 = vmatpush1.bf16.msra.mxu1 %v1318_v16 }
 0x4b6   :  { %850 = vmatprep.subr.bf16.mxu1 %v1355_v4 }
 0x4b9   :  { %851 = vmatpush1.bf16.msra.mxu1 %v1319_v17 }
 0x4ba   :  { %852 = vmatprep.subr.bf16.mxu1 %v1355_v4 }
 0x4bd   :  { %853 = vmatpush1.bf16.msra.mxu1 %v1320_v18 }
 0x4be   :  { %854 = vmatprep.subr.bf16.mxu1 %v1355_v4 }
 0x4c1   :  { %855 = vmatpush1.bf16.msra.mxu1 %v1321_v19 }
 0x4c2   :  { %856 = vmatprep.subr.bf16.mxu1 %v1355_v4 }
 0x4c5   :  { %857 = vmatpush1.bf16.msra.mxu1 %v1322_v20 }
 0x4c6   :  { %858 = vmatprep.subr.bf16.mxu1 %v1355_v4 }
 0x4c9   :  { %859 = vmatpush1.bf16.msra.mxu1 %v1323_v21 }
 0x4ca   :  { %860 = vmatprep.subr.bf16.mxu1 %v1355_v4 }
 0x4cd   :  { %861 = vmatpush1.bf16.msra.mxu1 %v1324_v22 }
 0x4ce   :  { %862 = vmatprep.subr.bf16.mxu1 %v1355_v4 }
 0x4d1   :  { %863 = vmatpush1.bf16.msra.mxu1 %v1325_v31 }
 0x577   :  { %v693_v24 = vpop.f32.mrb[4].mxu1 }
 0x578   :  { %v694_v25 = vadd.f32 %v1201_v23, %v693_v24  ;;  %v1247_v26 = vpop.f32.mrb[5].mxu1 }
 0x579   :  { %v696_v27 = vpop.f32.mrb[6].mxu1 }
 0x57a   :  { %vm699_vm8 = vcmp.ge.f32.partialorder %v694_v25, 0.0  ;;  %v700_v28 = vmul.f32 0.01, %v694_v25  ;;  %v1248_v29 = vpop.f32.mrb[7].mxu1 }
 0x57c   :  { %v701_v30 = vsel %vm699_vm8, %v694_v25, %v700_v28 }
 0x57d   :  { %703 = vst.msk [vmem:[#allocation6 + $0x1] sm:$0x1] %vm702_vm2, %v701_v30 }
 0x57e   :  { %705 = vst.msk [vmem:[#allocation6 + $0x2] sm:$0x2] %vm704_vm3, %v701_v30 }
 0x57f   :  { %707 = vst.msk [vmem:[#allocation6 + $0x3] sm:$0x4] %vm706_vm4, %v701_v30 }
 0x580   :  { %709 = vst.msk [vmem:[#allocation6 + $0x4] sm:$0x8] %vm708_vm5, %v701_v30 }
 0x581   :  { %711 = vst.msk [vmem:[#allocation6 + $0x7] sm:$0x10] %vm710_vm6, %v701_v30 }
 0x582   :  { %713 = vst.msk [vmem:[#allocation6 + $0x8] sm:$0x20] %vm712_vm7, %v701_v30 }
 0x583   :  { %715 = vst.msk [vmem:[#allocation6 + $0x9] sm:$0x40] %vm714_vm9, %v701_v30 }
 0x584   :  { %717 = vst.msk [vmem:[#allocation6 + $0xa] sm:$0x80] %vm716_vm10, %v701_v30 }
 0x587   :  { %v720_v32 = vld [vmem:[#allocation6 + $0x2] sm:$0xff] }
 0x588   :  { %v719_v34 = vld [vmem:[#allocation6 + $0x1] sm:$0xff] }
 0x589   :  { %v718_v42 = vld [vmem:[#allocation6] sm:$0xff] }
 0x58b   :  { %v728_v33 = vld [vmem:[#allocation6 + $0xc] sm:$0xff] }
 0x58c   :  { %v759_v35 = vpack.c.bf16 %v728_v33, %v720_v32  ;;  %v727_v36 = vld [vmem:[#allocation6 + $0xb] sm:$0xff] }
 0x58d   :  { %v1265_v37 = vpack.i.bf16 %v727_v36, %v719_v34  ;;  %v726_v41 = vld [vmem:[#allocation6 + $0xa] sm:$0xff] }
 0x58e   :  { %1219 = vmatprep.mubr.msk.bf16.mxu1 %vm17_vm0, %v759_v35 }
 0x58f   :  { %1266 = vrot.lane.b32.xlu0 %v1265_v37, %s1356_s28 }
 0x601   :  { %v1267_v38 = vpop.permute.xlu0 %1266 }
 0x602   :  { %v1269_v39 = vunpack.i.h.bf16 %v1267_v38  ;;  %v1268_v40 = vunpack.i.l.bf16 %v1267_v38 }
 0x604   :  { %v733_v43 = vsel %vm17_vm0, %v726_v41, %v1269_v39  ;;  %v725_v44 = vsel %vm17_vm0, %v718_v42, %v1268_v40  ;;  %v1220_v39 = vld [vmem:[%s1795_s2 + $0x5] ss:$0 sm:$0xff] }
 0x605   :  { %v758_v45 = vpack.c.bf16 %v733_v43, %v725_v44 }
 0x607   :  { %873 = vmatmul.mubr.bf16.vlgmr.msra.gmra.mrb[8].mxu1 %v758_v45 }
 0x6da   :  { %v874_v55 = vpop.f32.mrb[8].mxu1 }
 0x6db   :  { %v875_v56 = vadd.f32 %v1206_v54, %v874_v55  ;;  %v876_v57 = vpop.f32.mrb[9].mxu1 }
 0x6dc   :  { %v877_v59 = vpop.f32.mrb[10].mxu1 }
 0x6dd   :  { %vm881_vm12 = vcmp.ge.f32.partialorder %v875_v56, 0.0  ;;  %v883_v60 = vmul.f32 0.01, %v875_v56  ;;  %v878_v61 = vadd.f32 %v1206_v54, %v877_v59  ;;  %v879_v62 = vpop.f32.mrb[11].mxu1 }
 0x6df   :  { %v885_v63 = vsel %vm881_vm12, %v875_v56, %v883_v60  ;;  %vm882_vm13 = vcmp.ge.f32.partialorder %v878_v61, 0.0  ;;  %v884_v1 = vmul.f32 0.01, %v878_v61 }
 0x6e0   :  { %887 = vst.msk [vmem:[#allocation7 + $0x1] sm:$0x1] %vm702_vm2, %v885_v63 }
 0x6e1   :  { %888 = vst.msk [vmem:[#allocation7 + $0x2] sm:$0x2] %vm704_vm3, %v885_v63  ;;  %v886_v3 = vsel %vm882_vm13, %v878_v61, %v884_v1 }
 0x6e2   :  { %889 = vst.msk [vmem:[#allocation7 + $0x3] sm:$0x4] %vm706_vm4, %v885_v63  ;;  %897 = vst.msk [vmem:[#allocation7 + $0x14] sm:$0x4] %vm706_vm4, %v886_v3 }
 0x6e3   :  { %890 = vst.msk [vmem:[#allocation7 + $0x4] sm:$0x8] %vm708_vm5, %v885_v63  ;;  %898 = vst.msk [vmem:[#allocation7 + $0x15] sm:$0x8] %vm708_vm5, %v886_v3 }
 0x6e4   :  { %891 = vst.msk [vmem:[#allocation7 + $0x5] sm:$0x10] %vm710_vm6, %v885_v63  ;;  %899 = vst.msk [vmem:[#allocation7 + $0x16] sm:$0x10] %vm710_vm6, %v886_v3 }
 0x6e5   :  { %892 = vst.msk [vmem:[#allocation7 + $0x6] sm:$0x20] %vm712_vm7, %v885_v63  ;;  %900 = vst.msk [vmem:[#allocation7 + $0x17] sm:$0x20] %vm712_vm7, %v886_v3 }
 0x6e6   :  { %893 = vst.msk [vmem:[#allocation7 + $0x7] sm:$0x40] %vm714_vm9, %v885_v63  ;;  %901 = vst.msk [vmem:[#allocation7 + $0x18] sm:$0x40] %vm714_vm9, %v886_v3 }
 0x6e7   :  { %894 = vst.msk [vmem:[#allocation7 + $0x8] sm:$0x80] %vm716_vm10, %v885_v63  ;;  %902 = vst.msk [vmem:[#allocation7 + $0x19] sm:$0x80] %vm716_vm10, %v886_v3 }
 0x6e8   :  { %895 = vst.msk [vmem:[#allocation7 + $0x12] sm:$0x1] %vm702_vm2, %v886_v3 }
 0x6e9   :  { %896 = vst.msk [vmem:[#allocation7 + $0x13] sm:$0x2] %vm704_vm3, %v886_v3 }
 0x6ea   :  { %v905_v6 = vld [vmem:[#allocation7 + $0x1] sm:$0xff] }
 0x6eb   :  { %911 = vrot.lane.b32.xlu0 %v905_v6, %s1356_s28  ;;  %v907_v13 = vld [vmem:[#allocation7 + $0x2] sm:$0xff] }
 0x6ec   :  { %v903_v28 = vld [vmem:[#allocation7] sm:$0xff] }
 0x6ed   :  { %v904_v24 = vld [vmem:[#allocation7 + $0x8] sm:$0x7f]  ;;  %v920_v26 = vld [vmem:[#allocation7 + $0x19] sm:$0x7f] }
 0x6ee   :  { %v906_v7 = vld [vmem:[#allocation7 + $0x9] sm:$0x7f]  ;;  %v922_v15 = vld [vmem:[#allocation7 + $0x1a] sm:$0x7f] }
 0x6ef   :  { %v908_v12 = vld [vmem:[#allocation7 + $0xa] sm:$0x7f]  ;;  %v924_v16 = vld [vmem:[#allocation7 + $0x1b] sm:$0x7f] }
 0x6f0   :  { %v921_v8 = vld [vmem:[#allocation7 + $0x12] sm:$0xff]  ;;  %v944_v20 = vrot.slane %v924_v16, 1 }
 0x6f1   :  { %v923_v9 = vld [vmem:[#allocation7 + $0x13] sm:$0xff]  ;;  %v1270_v10 = vpack.i.bf16 %v906_v7, %v921_v8 }
 0x6f2   :  { %v941_v11 = vrot.slane %v923_v9, 1  ;;  %v919_v21 = vld [vmem:[#allocation7 + $0x11] sm:$0xff] }
 0x6f3   :  { %1271 = vrot.lane.b32.xlu1 %v1270_v10, %s1356_s28 }
 0x6f4   :  { %v953_v4 = vsel %vm939_vm14, %v908_v12, %v941_v11  ;;  %v945_v31 = vsel %vm939_vm14, %v941_v11, %v944_v20 }
 0x6f5   :  { %v979_v14 = vpack.c.bf16 %v953_v4, %v907_v13  ;;  %v981_v36 = vpack.c.bf16 %v944_v20, %v945_v31 }
 0x6f7   :  { %1233 = vmatprep.mubr.msk.bf16.mxu0 %vm17_vm0, %v979_v14  ;;  %929 = vrot.lane.b32.xlu1 %v922_v15, %s1356_s28 }
 0x75d   :  { %v912_v22 = vpop.permute.xlu0 %911 }
 0x75e   :  { %v917_v32 = vsel %vm17_vm0, %v903_v28, %v912_v22 }
 0x765   :  { %v1272_v17 = vpop.permute.xlu1 %1271 }
 0x766   :  { %v1274_v18 = vunpack.i.h.bf16 %v1272_v17  ;;  %v1273_v19 = vunpack.i.l.bf16 %v1272_v17 }
 0x768   :  { %v933_v23 = vsel %vm17_vm0, %v919_v21, %v1273_v19  ;;  %v918_v29 = vsel %vm17_vm0, %v904_v24, %v1274_v18 }
 0x769   :  { %v940_v25 = vrot.slane %v933_v23, 1  ;;  %v930_v27 = vpop.permute.xlu1 %929 }
 0x76a   :  { %v934_v30 = vsel %vm17_vm0, %v920_v26, %v930_v27 }
 0x76b   :  { %v952_v33 = vsel %vm939_vm14, %v918_v29, %v940_v25  ;;  %v942_v35 = vrot.slane %v934_v30, 1 }
 0x76c   :  { %v978_v34 = vpack.c.bf16 %v952_v33, %v917_v32 }
 0x76d   :  { %v943_v37 = vsel %vm939_vm14, %v940_v25, %v942_v35 }
 0x76e   :  { %1098 = vmatmul.mubr.bf16.vlgmr.msra.gmra.mrb[8].mxu0 %v978_v34  ;;  %v980_v38 = vpack.c.bf16 %v942_v35, %v943_v37 }
 0x76f   :  { %1234 = vmatprep.mubr.msk.bf16.mxu0 %vm17_vm0, %v981_v36  ;;  %vm1142_vm0 = vcmask 490496  }
 0x776   :  { %1106 = vmatmul.mubr.bf16.gmra.mrb[12].mxu0 %v980_v38 }
 0x841   :  { %v1099_v40 = vpop.f32.mrb[8].mxu0 }
 0x842   :  { %v1100_v41 = vadd.f32 %v1220_v39, %v1099_v40  ;;  %v1101_v42 = vpop.f32.mrb[9].mxu0 }
 0x843   :  { %v1102_v43 = vpop.f32.mrb[10].mxu0 }
 0x844   :  { %v1114_v44 = vsub.f32 0.0, %v1100_v41  ;;  %v1103_v45 = vadd.f32 %v1220_v39, %v1102_v43  ;;  %v1104_v46 = vpop.f32.mrb[11].mxu0 }
 0x846   :  { %v1118_v47 = vmul.f32 1.442695, %v1114_v44  ;;  %v1115_v48 = vsub.f32 0.0, %v1103_v45 }
 0x848   :  { %1338 = vpow2.f32 %v1118_v47  ;;  %v1120_v0 = vmul.f32 1.442695, %v1115_v48 }
 0x849   :  { %v1107_v49 = vpop.f32.mrb[12].mxu0 }
 0x84a   :  { %1340 = vpow2.f32 %v1120_v0  ;;  %v1108_v50 = vadd.f32 %v1220_v39, %v1107_v49  ;;  %v1109_v51 = vpop.f32.mrb[13].mxu0 }
 0x84b   :  { %v1110_v52 = vpop.f32.mrb[14].mxu0 }
 0x84c   :  { %v1116_v53 = vsub.f32 0.0, %v1108_v50  ;;  %v1111_v54 = vadd.f32 %v1220_v39, %v1110_v52  ;;  %v1112_v55 = vpop.f32.mrb[15].mxu0 }
 0x84e   :  { %v1122_v56 = vmul.f32 1.442695, %v1116_v53  ;;  %v1117_v57 = vsub.f32 0.0, %v1111_v54 }
 0x850   :  { %1342 = vpow2.f32 %v1122_v56  ;;  %v1124_v58 = vmul.f32 1.442695, %v1117_v57 }
 0x852   :  { %v1339_v59 = vpop.eup %1338  ;;  %1344 = vpow2.f32 %v1124_v58 }
 0x853   :  { %v1126_v60 = vadd.f32 1.0, %v1339_v59 }
 0x854   :  { %v1341_v61 = vpop.eup %1340 }
 0x855   :  { %1346 = vrcp.f32 %v1126_v60  ;;  %v1127_v62 = vadd.f32 1.0, %v1341_v61 }
 0x857   :  { %1348 = vrcp.f32 %v1127_v62 }
 0x85a   :  { %v1343_v63 = vpop.eup %1342 }
 0x85b   :  { %v1128_v1 = vadd.f32 1.0, %v1343_v63 }
 0x85c   :  { %v1345_v2 = vpop.eup %1344 }
 0x85d   :  { %1350 = vrcp.f32 %v1128_v1  ;;  %v1129_v3 = vadd.f32 1.0, %v1345_v2 }
 0x85f   :  { %v1347_v5 = vpop.eup %1346  ;;  %1352 = vrcp.f32 %v1129_v3 }
 0x860   :  { %v1134_v6 = vmax.f32 %v1347_v5, 0.0 }
 0x861   :  { %v1349_v7 = vpop.eup %1348 }
 0x862   :  { %v1138_v8 = vmin.f32 %v1134_v6, 1.0  ;;  %v1135_v9 = vmax.f32 %v1349_v7, 0.0 }
 0x864   :  { %v1143_v10 = vsel %vm1142_vm0, %v1138_v8, 0.0  ;;  %v1139_v11 = vmin.f32 %v1135_v9, 1.0 }
 0x865   :  { %1147 = vst [vmem:[%s1797_s3] sm:$0xff] %v1143_v10 }
 0x866   :  { %v1144_v12 = vsel %vm1142_vm0, %v1139_v11, 0.0 }
 0x867   :  { %v1351_v13 = vpop.eup %1350  ;;  %1148 = vst [vmem:[%s1797_s3 + $0x8] sm:$0xff] %v1144_v12 }
 0x868   :  { %v1136_v4 = vmax.f32 %v1351_v13, 0.0 }
 0x869   :  { %v1353_v14 = vpop.eup %1352 }
 0x86a   :  { %v1140_v15 = vmin.f32 %v1136_v4, 1.0  ;;  %v1137_v16 = vmax.f32 %v1353_v14, 0.0 }
 0x86c   :  { %v1145_v17 = vsel %vm1142_vm0, %v1140_v15, 0.0  ;;  %v1141_v18 = vmin.f32 %v1137_v16, 1.0 }
 0x86d   :  { %1149 = vst [vmem:[%s1797_s3 + $0x10] sm:$0xff] %v1145_v17 }
 0x86e   :  { %v1146_v19 = vsel %vm1142_vm0, %v1141_v18, 0.0 }
 0x86f   :  { %1150 = vst [vmem:[%s1797_s3 + $0x18] sm:$0x3f] %v1146_v19 }

</bundles_post_ra>
